<compile_context>
chip_gen: v6e
topology: v6e:2x2x1
jax: 0.10.0
libtpu: 0.0.40
codegen_flags: <defaults>
</compile_context>

<pallas_src>
import jax
import jax.numpy as jnp
import numpy as np
from jax.experimental import pallas as pl
from jax.experimental.pallas import tpu as pltpu


TB = 128          # batch rows per grid step (multiple of GROUP_ROWS); ~128 is a good
                  # cross-generation default, can go 256 on v6e/v7x for big batches.
GROUP_ROWS = 8    # batch rows gathered per DMA burst -> GROUP_ROWS*S copies in flight.


def _round_up(n, m):
    return ((n + m - 1) // m) * m


def mlp_fused_kernel(ids_ref,    # SMEM (b_pad*S,) int32   (scalar prefetch, flattened)
                     emb_hbm,    # HBM  (V, E_pad) f32     (memory_space=pl.ANY)
                     mask_ref,   # VMEM (TB, GROUP_ROWS*S) f32  block-diag mask * 1/len
                     w1_ref, b1_ref, w2_ref, b2_ref, wo_ref, bo_ref,
                     out_ref,    # VMEM (TB, C_pad) f32
                     gbuf,       # VMEM (2, GROUP_ROWS*S, E_pad) f32  gather double-buffer
                     sem,        # DMA semaphores (2,)  one per landing-buffer slot
                     pooled_ref):  # VMEM (TB, E_pad) f32
    tb = pooled_ref.shape[0]
    grp = gbuf.shape[1]                      # tokens per gather group (= GROUP_ROWS * S)
    n_groups = tb // GROUP_ROWS
    tok_base = pl.program_id(0) * (n_groups * grp)    # flat-token offset of this tile

    # Zero landing buffers BEFORE any DMA issue so skipped <PAD> slots are exactly 0
    # (never 0 * stale-NaN from uninitialized VMEM on the first grid step).
    gbuf[...] = jnp.zeros_like(gbuf)

    def issue_group(g, slot):
        goff = tok_base + g * grp

        @pl.loop(0, grp)
        def _(t):
            tok = ids_ref[goff + t]
            @pl.when(tok != 0)               # skip <PAD>: no HBM round-trip
            def _():
                pltpu.make_async_copy(
                    emb_hbm.at[pl.ds(tok, 1), :],
                    gbuf.at[slot, pl.ds(t, 1), :],
                    sem.at[slot]).start()

    def wait_group(g, slot):
        goff = tok_base + g * grp

        @pl.loop(0, grp)
        def _(t):
            tok = ids_ref[goff + t]          # SMEM read before the wait
            @pl.when(tok != 0)               # same gate as the start -> counts match
            def _():
                pltpu.make_async_copy(       # identical descriptor as the start
                    emb_hbm.at[pl.ds(tok, 1), :],
                    gbuf.at[slot, pl.ds(t, 1), :],
                    sem.at[slot]).wait()

    issue_group(0, 0)

    @pl.loop(0, n_groups)
    def _(g):
        slot = g & 1
        wait_group(g, slot)

        @pl.when(g + 1 < n_groups)
        def _():
            issue_group(g + 1, 1 - slot)     # prefetch next group while we reduce this one

        # Masked mean pooling as one MXU matmul: (8, 64) block-diag mask x (64, E_pad).
        r0 = pl.multiple_of(g * GROUP_ROWS, GROUP_ROWS)
        pooled_ref[pl.ds(r0, GROUP_ROWS), :] = jnp.dot(
            mask_ref[pl.ds(r0, GROUP_ROWS), :], gbuf[slot],
            preferred_element_type=jnp.float32)

    # Classifier: bf16 MXU inputs, f32 accumulation; bias add + ReLU stay f32.
    x = pooled_ref[...].astype(jnp.bfloat16)
    h = jnp.dot(x, w1_ref[...], preferred_element_type=jnp.float32) + b1_ref[...]
    h = jnp.maximum(h, 0.0).astype(jnp.bfloat16)
    h = jnp.dot(h, w2_ref[...], preferred_element_type=jnp.float32) + b2_ref[...]
    h = jnp.maximum(h, 0.0).astype(jnp.bfloat16)
    out_ref[...] = (
        jnp.dot(h, wo_ref[...], preferred_element_type=jnp.float32) + bo_ref[...])


def _pad2d(x, rows, cols, dtype=None):
    dtype = x.dtype if dtype is None else dtype
    out = jnp.zeros((rows, cols), dtype)
    return out.at[:x.shape[0], :x.shape[1]].set(x.astype(dtype))


def prepare_params(emb_table, params):
    """Zero-pad feature dims to lane multiples (once); pre-cast matmul weights to bf16."""
    w1, b1, w2, b2, wo, bo = params
    e = emb_table.shape[1]
    h1, h2, c = w1.shape[1], w2.shape[1], wo.shape[1]
    e_pad = _round_up(e, 128)     # 300 -> 384
    h1_pad = _round_up(h1, 128)   # 32  -> 128
    h2_pad = _round_up(h2, 128)   # 32  -> 128
    c_pad = _round_up(c, 128)     # 4   -> 128
    return (
        _pad2d(emb_table, emb_table.shape[0], e_pad, jnp.float32),  # gathered table stays f32
        _pad2d(w1, e_pad, h1_pad, jnp.bfloat16),
        _pad2d(b1, 1, h1_pad, jnp.float32),
        _pad2d(w2, h1_pad, h2_pad, jnp.bfloat16),
        _pad2d(b2, 1, h2_pad, jnp.float32),
        _pad2d(wo, h2_pad, c_pad, jnp.bfloat16),
        _pad2d(bo, 1, c_pad, jnp.float32),
    )


def mlp_forward(ids, padded, num_classes):
    """ids: (B, S) int32 token ids (0 == <PAD>); padded: output of prepare_params."""
    emb_p, w1, b1, w2, b2, wo, bo = padded
    B, S = ids.shape
    e_pad, h1_pad = w1.shape
    h2_pad = w2.shape[1]
    c_pad = wo.shape[1]
    grp = GROUP_ROWS * S

    # grid length >= 2 so the ("parallel",) axis actually feeds both v7x TensorCores.
    num_tiles = max(2, pl.cdiv(B, TB))
    b_pad = num_tiles * TB

    ids_p = jnp.zeros((b_pad, S), jnp.int32).at[:B].set(ids.astype(jnp.int32))
    mask = (ids_p != 0).astype(jnp.float32)                               # (b_pad, S)
    inv_len = 1.0 / jnp.maximum(jnp.sum(mask, -1, keepdims=True), 1.0)    # (b_pad, 1)
    # Block-diagonal masked-mean LHS: row (g*R + i) of a group has inv_len*(tok != 0) at
    # columns i*S + s and zeros elsewhere, so mask_blk_rows @ gathered_rows == mean(emb).
    m = (mask * inv_len).reshape(b_pad // GROUP_ROWS, GROUP_ROWS, S)
    eye = jnp.eye(GROUP_ROWS, dtype=jnp.float32)
    mask_blk = jnp.einsum('gis,ij->gijs', m, eye).reshape(b_pad, grp)

    ids_flat = ids_p.reshape(-1)   # 1-D SMEM prefetch (no (b_pad, S)->(., 128) padding)

    gemm = e_pad * h1_pad + h1_pad * h2_pad + h2_pad * c_pad
    flops = 2 * b_pad * (gemm + grp * e_pad)
    bytes_accessed = (
        b_pad * S * 4                    # token ids (SMEM prefetch)
        + b_pad * S * e_pad * 4          # DMA-gathered embedding rows (upper bound)
        + b_pad * grp * 4                # block-diagonal mask
        + gemm * 2                       # bf16 weights
        + (h1_pad + h2_pad + c_pad) * 4  # f32 biases
        + b_pad * c_pad * 4)             # output logits

    fixed = lambda i, ids_smem: (0, 0)

    out = pl.pallas_call(
        mlp_fused_kernel,
        out_shape=jax.ShapeDtypeStruct((b_pad, c_pad), jnp.float32),
        grid_spec=pltpu.PrefetchScalarGridSpec(
            num_scalar_prefetch=1,
            grid=(num_tiles,),
            in_specs=[
                pl.BlockSpec(memory_space=pl.ANY),                    # emb table stays in HBM
                pl.BlockSpec((TB, grp), lambda i, ids_smem: (i, 0)),  # block-diag mask
                pl.BlockSpec((e_pad, h1_pad), fixed),                 # w1 (bf16)
                pl.BlockSpec((1, h1_pad), fixed),                     # b1
                pl.BlockSpec((h1_pad, h2_pad), fixed),                # w2 (bf16)
                pl.BlockSpec((1, h2_pad), fixed),                     # b2
                pl.BlockSpec((h2_pad, c_pad), fixed),                 # wo (bf16)
                pl.BlockSpec((1, c_pad), fixed),                      # bo
            ],
            out_specs=pl.BlockSpec((TB, c_pad), lambda i, ids_smem: (i, 0)),
            scratch_shapes=[
                pltpu.VMEM((2, grp, e_pad), jnp.float32),   # gather double-buffer
                pltpu.SemaphoreType.DMA((2,)),              # one sem per buffer slot
                pltpu.VMEM((TB, e_pad), jnp.float32),       # pooled (already / len)
            ],
        ),
        compiler_params=pltpu.CompilerParams(
            dimension_semantics=("parallel",)),             # shards batch tiles across TCs
        cost_estimate=pl.CostEstimate(
            flops=int(flops), transcendentals=0, bytes_accessed=int(bytes_accessed)),
    )(ids_flat, emb_p, mask_blk, w1, b1, w2, b2, wo, bo)

    return out[:B, :num_classes]


def _init_linear(key, din, dout):
    # Deterministic PyTorch-like U(-1/sqrt(din), 1/sqrt(din)) init; stored as (in, out).
    kw, kb = jax.random.split(key)
    bound = 1.0 / float(np.sqrt(din))
    w = jax.random.uniform(kw, (din, dout), jnp.float32, -bound, bound)
    b = jax.random.uniform(kb, (1, dout), jnp.float32, -bound, bound)
    return w, b


def _reference_forward(ids, padded, num_classes):
    """Pure-JAX reference on the same padded/bf16 params (same numerics as the kernel)."""
    emb_p, w1, b1, w2, b2, wo, bo = padded
    mask = (ids != 0).astype(jnp.float32)
    lens = jnp.sum(mask, axis=-1, keepdims=True)
    w = mask / jnp.maximum(lens, 1.0)                                # masked mean weights
    emb = jnp.take(emb_p, ids, axis=0)                               # (B, S, E_pad) f32
    pooled = jnp.einsum('bs,bse->be', w, emb)
    x = pooled.astype(jnp.bfloat16)
    h = jnp.maximum(jnp.dot(x, w1, preferred_element_type=jnp.float32) + b1, 0.0)
    h = jnp.maximum(jnp.dot(h.astype(jnp.bfloat16), w2,
                            preferred_element_type=jnp.float32) + b2, 0.0)
    logits = jnp.dot(h.astype(jnp.bfloat16), wo,
                     preferred_element_type=jnp.float32) + bo
    return logits[:, :num_classes]


if __name__ == "__main__":
    key = jax.random.PRNGKey(0)
    B, S = 2, 8              # batch, max_seq_len
    V, E = 32, 300           # synthetic vocab size, embedding dim (glove-style 300)
    hid_dims = [32, 32]      # config['architecture']['hid_dims']
    num_classes = 4

    keys = iter(jax.random.split(key, 8))

    # Synthetic pretrained embedding table (row 0 == <PAD> is zero, as in the real loader).
    emb_table = 0.1 * jax.random.normal(next(keys), (V, E), jnp.float32)
    emb_table = emb_table.at[0].set(0.0)

    # Token ids with some padding to exercise the mask / PAD-skip path.
    ids = jax.random.randint(next(keys), (B, S), 1, V).astype(jnp.int32)
    ids = ids.at[1, 5:].set(0)

    w1, b1 = _init_linear(next(keys), E, hid_dims[0])
    w2, b2 = _init_linear(next(keys), hid_dims[0], hid_dims[1])
    wo, bo = _init_linear(next(keys), hid_dims[1], num_classes)
    padded = prepare_params(emb_table, (w1, b1, w2, b2, wo, bo))

    logits = jax.block_until_ready(mlp_forward(ids, padded, num_classes))
    assert logits.shape == (B, num_classes)
    assert logits.dtype == jnp.float32

    ref = jax.block_until_ready(_reference_forward(ids, padded, num_classes))
    np.testing.assert_allclose(np.asarray(logits), np.asarray(ref), rtol=2e-2, atol=2e-2)

    print("KERNEL_OK")
</pallas_src>

<mosaic_0001>
module attributes {stable_mosaic.version = 11 : i64} {
  func.func @mlp_fused_kernel(%arg0: i32, %arg1: memref<2048xi32, #tpu.memory_space<smem>>, %arg2: memref<32x384xf32, #tpu.memory_space<any>>, %arg3: memref<128x64xf32, #tpu.memory_space<vmem>>, %arg4: memref<384x128xbf16, #tpu.memory_space<vmem>>, %arg5: memref<1x128xf32, #tpu.memory_space<vmem>>, %arg6: memref<128x128xbf16, #tpu.memory_space<vmem>>, %arg7: memref<1x128xf32, #tpu.memory_space<vmem>>, %arg8: memref<128x128xbf16, #tpu.memory_space<vmem>>, %arg9: memref<1x128xf32, #tpu.memory_space<vmem>>, %arg10: memref<128x128xf32, #tpu.memory_space<vmem>>, %arg11: memref<2x64x384xf32, #tpu.memory_space<vmem>>, %arg12: memref<2x!tpu.dma_semaphore, #tpu.memory_space<semaphore_mem>>, %arg13: memref<128x384xf32, #tpu.memory_space<vmem>>) attributes {dimension_semantics = [#tpu.dimension_semantics<parallel>], iteration_bounds = array<i64: 2>, scalar_prefetch = 1 : i64, scratch_operands = 3 : i64, tpu.core_type = #tpu.core_type<tc>, window_params = [{}, {transform_indices = @transform_1, window_bounds = array<i64: 128, 64>}, {pipeline_mode = #tpu.pipeline_mode<synchronous>, transform_indices = @transform_2, window_bounds = array<i64: 384, 128>}, {pipeline_mode = #tpu.pipeline_mode<synchronous>, transform_indices = @transform_3, window_bounds = array<i64: 1, 128>}, {pipeline_mode = #tpu.pipeline_mode<synchronous>, transform_indices = @transform_4, window_bounds = array<i64: 128, 128>}, {pipeline_mode = #tpu.pipeline_mode<synchronous>, transform_indices = @transform_5, window_bounds = array<i64: 1, 128>}, {pipeline_mode = #tpu.pipeline_mode<synchronous>, transform_indices = @transform_6, window_bounds = array<i64: 128, 128>}, {pipeline_mode = #tpu.pipeline_mode<synchronous>, transform_indices = @transform_7, window_bounds = array<i64: 1, 128>}, {transform_indices = @transform_8, window_bounds = array<i64: 128, 128>}]} {
    %c1024_i32 = arith.constant 1024 : i32
    %0 = arith.muli %arg0, %c1024_i32 : i32
    %cst = arith.constant 0.000000e+00 : f32
    %1 = vector.broadcast %cst : f32 to vector<2x64x384xf32>
    %c0 = arith.constant 0 : index
    %c0_0 = arith.constant 0 : index
    %c0_1 = arith.constant 0 : index
    %2 = vector.load %arg11[%c0, %c0_0, %c0_1] : memref<2x64x384xf32, #tpu.memory_space<vmem>>, vector<2x64x384xf32>
    tpu.vector_store %arg11[%c0, %c0_0, %c0_1], %1 {strides = array<i32>} : memref<2x64x384xf32, #tpu.memory_space<vmem>>, vector<2x64x384xf32>,
    %c0_i32 = arith.constant 0 : i32
    %3 = arith.addi %0, %c0_i32 : i32
    %c0_i32_2 = arith.constant 0 : i32
    %c64_i32 = arith.constant 64 : i32
    %4 = arith.addi %c0_i32_2, %c64_i32 : i32
    %c1_i32 = arith.constant 1 : i32
    scf.for %arg14 = %c0_i32_2 to %4 step %c1_i32  : i32 {
      %c1_i32_28 = arith.constant 1 : i32
      %30 = arith.muli %arg14, %c1_i32_28 : i32
      %c0_i32_29 = arith.constant 0 : i32
      %31 = arith.addi %c0_i32_29, %30 : i32
      %32 = arith.addi %3, %31 : i32
      %33 = arith.index_cast %32 : i32 to index
      %34 = memref.load %arg1[%33] : memref<2048xi32, #tpu.memory_space<smem>>
      %c0_i32_30 = arith.constant 0 : i32
      %35 = arith.cmpi ne, %34, %c0_i32_30 : i32
      %36 = arith.extui %35 : i1 to i32
      %c0_i32_31 = arith.constant 0 : i32
      %37 = arith.cmpi ne, %36, %c0_i32_31 : i32
      scf.if %37 {
        %c0_i32_32 = arith.constant 0 : i32
        %c0_i32_33 = arith.constant 0 : i32
        %c0_i32_34 = arith.constant 0 : i32
        %38 = tpu.memref_slice %arg2[%34, %c0_i32_34] : memref<32x384xf32, #tpu.memory_space<any>> -> memref<1x384xf32, #tpu.memory_space<any>>
        %c0_i32_35 = arith.constant 0 : i32
        %39 = tpu.memref_slice %arg11[%c0_i32_32, %31, %c0_i32_35] : memref<2x64x384xf32, #tpu.memory_space<vmem>> -> memref<1x1x384xf32, #tpu.memory_space<vmem>>
        %40 = tpu.memref_squeeze %39 : memref<1x1x384xf32, #tpu.memory_space<vmem>> -> memref<1x384xf32, #tpu.memory_space<vmem>>
        %41 = tpu.memref_slice %arg12[%c0_i32_33] : memref<2x!tpu.dma_semaphore, #tpu.memory_space<semaphore_mem>> -> memref<1x!tpu.dma_semaphore, #tpu.memory_space<semaphore_mem>>
        %42 = tpu.memref_squeeze %41 : memref<1x!tpu.dma_semaphore, #tpu.memory_space<semaphore_mem>> -> memref<!tpu.dma_semaphore, #tpu.memory_space<semaphore_mem>>
        tpu.enqueue_dma source(%38 : memref<1x384xf32, #tpu.memory_space<any>>) target(%40 : memref<1x384xf32, #tpu.memory_space<vmem>>) target_semaphore(%42 : memref<!tpu.dma_semaphore, #tpu.memory_space<semaphore_mem>>)
      } else {
      }
    }
    %c64_i32_3 = arith.constant 64 : i32
    %c0_i32_4 = arith.constant 0 : i32
    %c16_i32 = arith.constant 16 : i32
    %5 = arith.addi %c0_i32_4, %c16_i32 : i32
    %c1_i32_5 = arith.constant 1 : i32
    scf.for %arg14 = %c0_i32_4 to %5 step %c1_i32_5  : i32 {
      %c1_i32_28 = arith.constant 1 : i32
      %30 = arith.muli %arg14, %c1_i32_28 : i32
      %c0_i32_29 = arith.constant 0 : i32
      %31 = arith.addi %c0_i32_29, %30 : i32
      %c1_i32_30 = arith.constant 1 : i32
      %32 = arith.andi %31, %c1_i32_30 : i32
      %c64_i32_31 = arith.constant 64 : i32
      %33 = arith.muli %31, %c64_i32_31 : i32
      %34 = arith.addi %0, %33 : i32
      %c0_i32_32 = arith.constant 0 : i32
      %c64_i32_33 = arith.constant 64 : i32
      %35 = arith.addi %c0_i32_32, %c64_i32_33 : i32
      %c1_i32_34 = arith.constant 1 : i32
      scf.for %arg15 = %c0_i32_32 to %35 step %c1_i32_34  : i32 {
        %c1_i32_44 = arith.constant 1 : i32
        %50 = arith.muli %arg15, %c1_i32_44 : i32
        %c0_i32_45 = arith.constant 0 : i32
        %51 = arith.addi %c0_i32_45, %50 : i32
        %52 = arith.addi %34, %51 : i32
        %53 = arith.index_cast %52 : i32 to index
        %54 = memref.load %arg1[%53] : memref<2048xi32, #tpu.memory_space<smem>>
        %c0_i32_46 = arith.constant 0 : i32
        %55 = arith.cmpi ne, %54, %c0_i32_46 : i32
        %56 = arith.extui %55 : i1 to i32
        %c0_i32_47 = arith.constant 0 : i32
        %57 = arith.cmpi ne, %56, %c0_i32_47 : i32
        scf.if %57 {
          %c0_i32_48 = arith.constant 0 : i32
          %58 = tpu.memref_slice %arg2[%54, %c0_i32_48] : memref<32x384xf32, #tpu.memory_space<any>> -> memref<1x384xf32, #tpu.memory_space<any>>
          %c0_i32_49 = arith.constant 0 : i32
          %59 = tpu.memref_slice %arg11[%32, %51, %c0_i32_49] : memref<2x64x384xf32, #tpu.memory_space<vmem>> -> memref<1x1x384xf32, #tpu.memory_space<vmem>>
          %60 = tpu.memref_squeeze %59 : memref<1x1x384xf32, #tpu.memory_space<vmem>> -> memref<1x384xf32, #tpu.memory_space<vmem>>
          %61 = tpu.memref_slice %arg12[%32] : memref<2x!tpu.dma_semaphore, #tpu.memory_space<semaphore_mem>> -> memref<1x!tpu.dma_semaphore, #tpu.memory_space<semaphore_mem>>
          %62 = tpu.memref_squeeze %61 : memref<1x!tpu.dma_semaphore, #tpu.memory_space<semaphore_mem>> -> memref<!tpu.dma_semaphore, #tpu.memory_space<semaphore_mem>>
          tpu.wait_dma2 semaphore(%62 : memref<!tpu.dma_semaphore, #tpu.memory_space<semaphore_mem>>) src(%58 : memref<1x384xf32, #tpu.memory_space<any>>) dst(%60 : memref<1x384xf32, #tpu.memory_space<vmem>>)
        } else {
        }
      }
      %c64_i32_35 = arith.constant 64 : i32
      %c1_i32_36 = arith.constant 1 : i32
      %36 = arith.addi %31, %c1_i32_36 : i32
      %c16_i32_37 = arith.constant 16 : i32
      %37 = arith.cmpi slt, %36, %c16_i32_37 : i32
      %38 = arith.extui %37 : i1 to i32
      %c0_i32_38 = arith.constant 0 : i32
      %39 = arith.cmpi ne, %38, %c0_i32_38 : i32
      scf.if %39 {
        %c1_i32_44 = arith.constant 1 : i32
        %50 = arith.addi %31, %c1_i32_44 : i32
        %c1_i32_45 = arith.constant 1 : i32
        %51 = arith.subi %c1_i32_45, %32 : i32
        %c64_i32_46 = arith.constant 64 : i32
        %52 = arith.muli %50, %c64_i32_46 : i32
        %53 = arith.addi %0, %52 : i32
        %c0_i32_47 = arith.constant 0 : i32
        %c64_i32_48 = arith.constant 64 : i32
        %54 = arith.addi %c0_i32_47, %c64_i32_48 : i32
        %c1_i32_49 = arith.constant 1 : i32
        scf.for %arg15 = %c0_i32_47 to %54 step %c1_i32_49  : i32 {
          %c1_i32_51 = arith.constant 1 : i32
          %55 = arith.muli %arg15, %c1_i32_51 : i32
          %c0_i32_52 = arith.constant 0 : i32
          %56 = arith.addi %c0_i32_52, %55 : i32
          %57 = arith.addi %53, %56 : i32
          %58 = arith.index_cast %57 : i32 to index
          %59 = memref.load %arg1[%58] : memref<2048xi32, #tpu.memory_space<smem>>
          %c0_i32_53 = arith.constant 0 : i32
          %60 = arith.cmpi ne, %59, %c0_i32_53 : i32
          %61 = arith.extui %60 : i1 to i32
          %c0_i32_54 = arith.constant 0 : i32
          %62 = arith.cmpi ne, %61, %c0_i32_54 : i32
          scf.if %62 {
            %c0_i32_55 = arith.constant 0 : i32
            %63 = tpu.memref_slice %arg2[%59, %c0_i32_55] : memref<32x384xf32, #tpu.memory_space<any>> -> memref<1x384xf32, #tpu.memory_space<any>>
            %c0_i32_56 = arith.constant 0 : i32
            %64 = tpu.memref_slice %arg11[%51, %56, %c0_i32_56] : memref<2x64x384xf32, #tpu.memory_space<vmem>> -> memref<1x1x384xf32, #tpu.memory_space<vmem>>
            %65 = tpu.memref_squeeze %64 : memref<1x1x384xf32, #tpu.memory_space<vmem>> -> memref<1x384xf32, #tpu.memory_space<vmem>>
            %66 = tpu.memref_slice %arg12[%51] : memref<2x!tpu.dma_semaphore, #tpu.memory_space<semaphore_mem>> -> memref<1x!tpu.dma_semaphore, #tpu.memory_space<semaphore_mem>>
            %67 = tpu.memref_squeeze %66 : memref<1x!tpu.dma_semaphore, #tpu.memory_space<semaphore_mem>> -> memref<!tpu.dma_semaphore, #tpu.memory_space<semaphore_mem>>
            tpu.enqueue_dma source(%63 : memref<1x384xf32, #tpu.memory_space<any>>) target(%65 : memref<1x384xf32, #tpu.memory_space<vmem>>) target_semaphore(%67 : memref<!tpu.dma_semaphore, #tpu.memory_space<semaphore_mem>>)
          } else {
          }
        }
        %c64_i32_50 = arith.constant 64 : i32
      } else {
      }
      %c8_i32 = arith.constant 8 : i32
      %40 = arith.muli %31, %c8_i32 : i32
      %41 = tpu.assume_multiple %40, 8 : i32
      %42 = arith.index_cast %41 : i32 to index
      %c0_39 = arith.constant 0 : index
      %43 = vector.load %arg3[%42, %c0_39] : memref<128x64xf32, #tpu.memory_space<vmem>>, vector<8x64xf32>
      %44 = arith.index_cast %32 : i32 to index
      %c0_40 = arith.constant 0 : index
      %c0_41 = arith.constant 0 : index
      %45 = vector.load %arg11[%44, %c0_40, %c0_41] : memref<2x64x384xf32, #tpu.memory_space<vmem>>, vector<1x64x384xf32>
      %46 = vector.shape_cast %45 : vector<1x64x384xf32> to vector<64x384xf32>
      %cst_42 = arith.constant dense<0.000000e+00> : vector<8x384xf32>
      %47 = tpu.matmul %43, %46, %cst_42 {dimension_numbers = #tpu.dot_dimension_numbers<[1], [0], [0], [1], [0, 0, 1, 1], [], []>} : vector<8x64xf32>, vector<64x384xf32>, vector<8x384xf32> -> vector<8x384xf32>
      %48 = arith.index_cast %41 : i32 to index
      %c0_43 = arith.constant 0 : index
      %49 = vector.load %arg13[%48, %c0_43] : memref<128x384xf32, #tpu.memory_space<vmem>>, vector<8x384xf32>
      tpu.vector_store %arg13[%48, %c0_43], %47 {strides = array<i32>} : memref<128x384xf32, #tpu.memory_space<vmem>>, vector<8x384xf32>,
    }
    %c16_i32_6 = arith.constant 16 : i32
    %c0_7 = arith.constant 0 : index
    %c0_8 = arith.constant 0 : index
    %6 = vector.load %arg13[%c0_7, %c0_8] : memref<128x384xf32, #tpu.memory_space<vmem>>, vector<128x384xf32>
    %7 = arith.truncf %6 : vector<128x384xf32> to vector<128x384xbf16>
    %c0_9 = arith.constant 0 : index
    %c0_10 = arith.constant 0 : index
    %8 = vector.load %arg4[%c0_9, %c0_10] : memref<384x128xbf16, #tpu.memory_space<vmem>>, vector<384x128xbf16>
    %cst_11 = arith.constant dense<0.000000e+00> : vector<128x128xf32>
    %9 = tpu.matmul %7, %8, %cst_11 {dimension_numbers = #tpu.dot_dimension_numbers<[1], [0], [0], [1], [0, 0, 1, 1], [], []>} : vector<128x384xbf16>, vector<384x128xbf16>, vector<128x128xf32> -> vector<128x128xf32>
    %c0_12 = arith.constant 0 : index
    %c0_13 = arith.constant 0 : index
    %10 = vector.load %arg5[%c0_12, %c0_13] : memref<1x128xf32, #tpu.memory_space<vmem>>, vector<1x128xf32>
    %11 = vector.broadcast %10 : vector<1x128xf32> to vector<128x128xf32>
    %12 = arith.addf %9, %11 : vector<128x128xf32>
    %cst_14 = arith.constant 0.000000e+00 : f32
    %13 = vector.broadcast %cst_14 : f32 to vector<128x128xf32>
    %14 = arith.maximumf %12, %13 : vector<128x128xf32>
    %15 = arith.truncf %14 : vector<128x128xf32> to vector<128x128xbf16>
    %c0_15 = arith.constant 0 : index
    %c0_16 = arith.constant 0 : index
    %16 = vector.load %arg6[%c0_15, %c0_16] : memref<128x128xbf16, #tpu.memory_space<vmem>>, vector<128x128xbf16>
    %cst_17 = arith.constant dense<0.000000e+00> : vector<128x128xf32>
    %17 = tpu.matmul %15, %16, %cst_17 {dimension_numbers = #tpu.dot_dimension_numbers<[1], [0], [0], [1], [0, 0, 1, 1], [], []>} : vector<128x128xbf16>, vector<128x128xbf16>, vector<128x128xf32> -> vector<128x128xf32>
    %c0_18 = arith.constant 0 : index
    %c0_19 = arith.constant 0 : index
    %18 = vector.load %arg7[%c0_18, %c0_19] : memref<1x128xf32, #tpu.memory_space<vmem>>, vector<1x128xf32>
    %19 = vector.broadcast %18 : vector<1x128xf32> to vector<128x128xf32>
    %20 = arith.addf %17, %19 : vector<128x128xf32>
    %cst_20 = arith.constant 0.000000e+00 : f32
    %21 = vector.broadcast %cst_20 : f32 to vector<128x128xf32>
    %22 = arith.maximumf %20, %21 : vector<128x128xf32>
    %23 = arith.truncf %22 : vector<128x128xf32> to vector<128x128xbf16>
    %c0_21 = arith.constant 0 : index
    %c0_22 = arith.constant 0 : index
    %24 = vector.load %arg8[%c0_21, %c0_22] : memref<128x128xbf16, #tpu.memory_space<vmem>>, vector<128x128xbf16>
    %cst_23 = arith.constant dense<0.000000e+00> : vector<128x128xf32>
    %25 = tpu.matmul %23, %24, %cst_23 {dimension_numbers = #tpu.dot_dimension_numbers<[1], [0], [0], [1], [0, 0, 1, 1], [], []>} : vector<128x128xbf16>, vector<128x128xbf16>, vector<128x128xf32> -> vector<128x128xf32>
    %c0_24 = arith.constant 0 : index
    %c0_25 = arith.constant 0 : index
    %26 = vector.load %arg9[%c0_24, %c0_25] : memref<1x128xf32, #tpu.memory_space<vmem>>, vector<1x128xf32>
    %27 = vector.broadcast %26 : vector<1x128xf32> to vector<128x128xf32>
    %28 = arith.addf %25, %27 : vector<128x128xf32>
    %c0_26 = arith.constant 0 : index
    %c0_27 = arith.constant 0 : index
    %29 = vector.load %arg10[%c0_26, %c0_27] : memref<128x128xf32, #tpu.memory_space<vmem>>, vector<128x128xf32>
    tpu.vector_store %arg10[%c0_26, %c0_27], %28 {strides = array<i32>} : memref<128x128xf32, #tpu.memory_space<vmem>>, vector<128x128xf32>,
    return
  }
  func.func @transform_1(%arg0: i32, %arg1: memref<2048xi32, #tpu.memory_space<smem>>) -> (i32, i32) {
    %c0_i32 = arith.constant 0 : i32
    %c0_i32_0 = arith.constant 0 : i32
    return %arg0, %c0_i32 : i32, i32
  }
  func.func @transform_2(%arg0: i32, %arg1: memref<2048xi32, #tpu.memory_space<smem>>) -> (i32, i32) {
    %c0_i32 = arith.constant 0 : i32
    %c0_i32_0 = arith.constant 0 : i32
    %c0_i32_1 = arith.constant 0 : i32
    return %c0_i32, %c0_i32_0 : i32, i32
  }
  func.func @transform_3(%arg0: i32, %arg1: memref<2048xi32, #tpu.memory_space<smem>>) -> (i32, i32) {
    %c0_i32 = arith.constant 0 : i32
    %c0_i32_0 = arith.constant 0 : i32
    %c0_i32_1 = arith.constant 0 : i32
    return %c0_i32, %c0_i32_0 : i32, i32
  }
  func.func @transform_4(%arg0: i32, %arg1: memref<2048xi32, #tpu.memory_space<smem>>) -> (i32, i32) {
    %c0_i32 = arith.constant 0 : i32
    %c0_i32_0 = arith.constant 0 : i32
    %c0_i32_1 = arith.constant 0 : i32
    return %c0_i32, %c0_i32_0 : i32, i32
  }
  func.func @transform_5(%arg0: i32, %arg1: memref<2048xi32, #tpu.memory_space<smem>>) -> (i32, i32) {
    %c0_i32 = arith.constant 0 : i32
    %c0_i32_0 = arith.constant 0 : i32
    %c0_i32_1 = arith.constant 0 : i32
    return %c0_i32, %c0_i32_0 : i32, i32
  }
  func.func @transform_6(%arg0: i32, %arg1: memref<2048xi32, #tpu.memory_space<smem>>) -> (i32, i32) {
    %c0_i32 = arith.constant 0 : i32
    %c0_i32_0 = arith.constant 0 : i32
    %c0_i32_1 = arith.constant 0 : i32
    return %c0_i32, %c0_i32_0 : i32, i32
  }
  func.func @transform_7(%arg0: i32, %arg1: memref<2048xi32, #tpu.memory_space<smem>>) -> (i32, i32) {
    %c0_i32 = arith.constant 0 : i32
    %c0_i32_0 = arith.constant 0 : i32
    %c0_i32_1 = arith.constant 0 : i32
    return %c0_i32, %c0_i32_0 : i32, i32
  }
  func.func @transform_8(%arg0: i32, %arg1: memref<2048xi32, #tpu.memory_space<smem>>) -> (i32, i32) {
    %c0_i32 = arith.constant 0 : i32
    %c0_i32_0 = arith.constant 0 : i32
    return %arg0, %c0_i32 : i32, i32
  }
}

</mosaic_0001>

<bundles_post_ra>
// kernel: tpu_custom_call.1
= control target key start
LH: loop header
LB: loop body
LE: loop exit
PB: predicated region body
PF: predicated region fallthrough
CT: control target
= control target key end

     0   :  { %s2814_s0 = inlined_call_operand.vmem [shape: s32[2048], index: 0, kind: input, shape index: {}]   ;;  %s2815_s1 = inlined_call_operand.vmem [shape: f32[32,384], index: 1, kind: input, shape index: {}]   ;;  %s2816_s2 = inlined_call_operand.vmem [shape: f32[256,64], index: 2, kind: input, shape index: {}]   ;;  %s2817_s3 = inlined_call_operand.vmem [shape: bf16[384,128], index: 3, kind: input, shape index: {}]   ;;  %s2818_s4 = inlined_call_operand.vmem [shape: f32[1,128], index: 4, kind: input, shape index: {}]   ;;  %s2819_s5 = inlined_call_operand.vmem [shape: bf16[128,128], index: 5, kind: input, shape index: {}]   ;;  %s2820_s6 = inlined_call_operand.vmem [shape: f32[1,128], index: 6, kind: input, shape index: {}]   ;;  %s2821_s7 = inlined_call_operand.hbm [shape: bf16[128,128], index: 7, kind: input, shape index: {}]   ;;  %s2822_s8 = inlined_call_operand.vmem [shape: f32[1,128], index: 8, kind: input, shape index: {}]   ;;  %s2823_s9 = inlined_call_operand.hbm [shape: f32[256,128], index: 9, kind: output, shape index: {}]  }
   0x1   :  { %2837 = sst [smem:[#allocation25_spill]] %s2816_s2  ;;  %s14_s11 = sshll.u32 %s2814_s0, 4  ;;  %s15_s11 = int_to_ptr.vmem [resolvable:$true] %s14_s11 }
   0x2   :  { %2838 = sst [smem:[#allocation26_spill]] %s2821_s7  ;;  %s2213_s12 = scalar_lea.vmem %s15_s11, 256 }
   0x3   :  { %2839 = sst [smem:[#allocation27_spill]] %s2823_s9  ;;  %p2214_p0 = scmp.ne.s32.totalorder %s15_s11, %s2213_s12 }
   0x4   :  { %p2218_p1 = scmp.lt.s32.totalorder %s15_s11, %s15_s11  ;;  %p2219_p2 = scmp.lt.s32.totalorder %s2213_s12, %s2213_s12 }
   0x6   :  { %p2220_p3 = por %p2219_p2, %p2218_p1 }
   0x8   :  { %p2221_p4 = pnand %p2220_p3, %p2214_p0 }
   0xa   :  { %2224 = shalt.err (!%p2221_p4)  }
   0xb   :  { %s2355_s13 = smov [#allocation6]  }
   0xc   :  { %17 = dma.vmem_to_smem %s15_s11, 256, %s2355_s13, [#allocation5] }
   0xd   :  { %2309 = dma.done.wait [#allocation5], 256 }
   0xe   :  { %2310 = vsyncadd [#allocation5], 4294967040 }
   0xf   :  { %19 = sfence }
  0x10   :  { %20 = vsyncpa [#allocation8], 0 }
  0x11   :  { %21 = vsyncpa [#allocation9], 0 }
  0x12   :  { %23 = vsyncpa [#allocation9 + $0x1], 0  ;;  %s2418_s14 = smov 0   ;;  %s2420_s15 = smov 0  }
  0x13   :  { %s2422_s0 = smov 0   ;;  %s2424_s16 = smov 0  }
  0x14 LB: > { %2840 = sst [smem:[#allocation17_spill]] %s2325_s14  ;;  %s2439_s17 = sadd.s32 4294967295, %s2337_s16   ;;  %s2337_s16 = sphi %s2424_s16, %s2868_s16   ;;  %s2333_s0 = sphi %s2422_s0, %s2870_s0   ;;  %s2329_s15 = sphi %s2420_s15, %s2872_s15   ;;  %s2325_s14 = sphi %s2418_s14, %s2871_s14  }
  0x15   : > { %2841 = sst [smem:[#allocation18_spill]] %s2333_s0  ;;  %s1752_s18 = sadd.s32 4294967294, %s2337_s16  }
  0x16   : > { %2842 = sst [smem:[#allocation19_spill]] %s2337_s16  ;;  %s2443_s19 = sadd.s32 1, %s2337_s16  }
  0x17   : > { %2843 = sst [smem:[#allocation20_spill]] %s2443_s19  ;;  %s188_s20 = sadd.s32 1, %s2333_s0 }
  0x18   : > { %s185_s21 = ssub.s32 %s2337_s16, %s2443_s19  ;;  %p198_p5 = scmp.ne.s32.totalorder %s2333_s0, %s2329_s15 }
  0x19   : > { %p186_p6 = scmp.eq.s32.totalorder %s185_s21, 0  ;;  %p199_p7 = scmp.eq.s32.totalorder %s2439_s17, 1 }
  0x1a   : > { %p204_p8 = scmp.ne.s32.totalorder %s2329_s15, %s2325_s14  ;;  %p205_p9 = scmp.eq.s32.totalorder %s1752_s18, 1 }
  0x1b   : > { %s2454_s22 = scalar_select %p186_p6, %s2333_s0, %s188_s20  }
  0x1c   : > { %p2456_p10 = por %p199_p7, %p198_p5  ;;  %p2460_p11 = por %p205_p9, %p204_p8 }
  0x1d   : > { %2844 = sst [smem:[#allocation21_spill]] %s2454_s22  ;;  %p1753_p12 = scmp.ge.s32.totalorder %s2337_s16, 1 }
  0x1e   : > { %s2845_s23 = scalar_select %p2456_p10, 1, 0 }
  0x1f   : > { %s2847_s24 = scalar_select %p2460_p11, 1, 0 }
  0x20   : > { %2846 = sst [smem:[#allocation22_spill]] %s2845_s23  ;;  %p212_p13 = scmp.lt.s32.totalorder %s2337_s16, 3 }
  0x21   : > { %2848 = sst [smem:[#allocation23_spill]] %s2847_s24  ;;  %p2096_p0 = scmp.eq.s32.totalorder %s2439_s17, 0 }
  0x22   : > { %p2467_p1 = pnand %p1753_p12, %p212_p13  ;;  %s2356_s26 = smov [#allocation7]  }
  0x23   : > { %s236_s27 = sshll.u32 %s2356_s26, 4  ;;  %s237_s27 = int_to_ptr.vmem [resolvable:$true] %s236_s27 }
  0x24   : > { %p2088_p2 = pneg %p2467_p1  ;;  %s2236_s28 = scalar_lea.vmem %s237_s27, 1024 }
  0x25   : > { %p2237_p5 = scmp.ne.s32.totalorder %s237_s27, %s2236_s28  ;;  %p2244_p8 = scmp.lt.s32.totalorder %s237_s27, %s237_s27 }
  0x26   : > { %p2089_p3 = pnand %p2096_p0, %p2088_p2  ;;  %p2245_p9 = scmp.lt.s32.totalorder %s2236_s28, %s2236_s28 }
  0x28   : > { %p2227_p4 = pneg %p2089_p3  ;;  %p2246_p11 = por %p2245_p9, %p2244_p8 }
  0x2a   : > { %p2239_p6 = pnand %p2237_p5, %p2227_p4 }
  0x2c   : > { %p2240_p7 = pneg %p2239_p6 }
  0x2e   : > { %p2247_p12 = pnand %p2246_p11, %p2240_p7 }
  0x30   : > { %2250 = shalt.err (!%p2247_p12)
}
  0x31   : > { %s2357_s29 = smov 64   ;;  %s2358_s30 = smov 4  }
  0x32   : > { %s2850_s7 = sld [smem:[#allocation26_spill]] }
  0x34   : > { %264 = sbr.rel (%p2467_p1) target bundleno = 1085 (0x43d), region = 48 }
  0x38   : > { %2091 = dma.hbm_to_vmem [thread:$0]  (!%p2089_p3), %s2850_s7, 1024, %s237_s27, [#allocation8], %s2357_s29, %s2357_s29, %s2358_s30  }
  0x39   : > { %2312 = dma.done.wait (%p2096_p0), [#allocation8], 1024  }
  0x3a   : > { %2314 = vsyncadd (%p2096_p0), [#allocation8], 4294966272  ;;  %s2824_s12 = sand.u32 1, %s2329_s15   ;;  %s1759_s13 = sshll.u32 %s2439_s17, 4  ;;  %v2359_v0 = vmov 0.0  }
  0x3b   : > { %s2488_s18 = sshll.u32 %s2824_s12, 7  ;;  %p2492_p11 = scmp.lt.s32.totalorder %s1759_s13, 31  ;;  %305 = vst [vmem:[#allocation2] sm:$0xff] %v2359_v0  ;;  %306 = vst [vmem:[#allocation2 + $0x8] sm:$0xff] %v2359_v0 }
  0x3c   : > { %307 = vst [vmem:[#allocation2 + $0x10] sm:$0xff] %v2359_v0  ;;  %308 = vst [vmem:[#allocation2 + $0x18] sm:$0xff] %v2359_v0  ;;  %s2497_s21 = sshll.u32 %s2439_s17, 10  ;;  %s2853_s2 = sld [smem:[#allocation25_spill]] }
  0x3d   : > { %309 = vst [vmem:[#allocation2 + $0x20] sm:$0xff] %v2359_v0  ;;  %310 = vst [vmem:[#allocation2 + $0x28] sm:$0xff] %v2359_v0  ;;  %2852 = sst [smem:[#allocation24_spill]] %s2497_s21  ;;  %s2874_s13 = smov (!%p2492_p11, %s1759_s13), 31 }
  0x3e   : > { %311 = vst [vmem:[#allocation2 + $0x30] sm:$0xff] %v2359_v0  ;;  %312 = vst [vmem:[#allocation2 + $0x38] sm:$0xff] %v2359_v0  ;;  %s1760_s25 = sshll.u32 %s2874_s13, 3  ;;  %s2509_s29 = scalar_lea.vmem [#allocation10], %s2488_s18 }
  0x3f   : > { %313 = vst [vmem:[#allocation2 + $0x40] sm:$0xff] %v2359_v0  ;;  %314 = vst [vmem:[#allocation2 + $0x48] sm:$0xff] %v2359_v0  ;;  %s2339_s30 = smov 0  }
  0x40   : > { %315 = vst [vmem:[#allocation2 + $0x50] sm:$0xff] %v2359_v0  ;;  %316 = vst [vmem:[#allocation2 + $0x58] sm:$0xff] %v2359_v0 }
  0x41   : > { %317 = vst [vmem:[#allocation2 + $0x60] sm:$0xff] %v2359_v0  ;;  %318 = vst [vmem:[#allocation2 + $0x68] sm:$0xff] %v2359_v0 }
  0x42   : > { %319 = vst [vmem:[#allocation2 + $0x70] sm:$0xff] %v2359_v0  ;;  %320 = vst [vmem:[#allocation2 + $0x78] sm:$0xff] %v2359_v0  ;;  %s2506_s28 = scalar_lea.vmem %s2853_s2, %s1760_s25 }
  0x43   : > { %321 = vst [vmem:[#allocation2 + $0x80] sm:$0xff] %v2359_v0  ;;  %322 = vst [vmem:[#allocation2 + $0x88] sm:$0xff] %v2359_v0 }
  0x44   : > { %323 = vst [vmem:[#allocation2 + $0x90] sm:$0xff] %v2359_v0  ;;  %324 = vst [vmem:[#allocation2 + $0x98] sm:$0xff] %v2359_v0 }
  0x45   : > { %325 = vst [vmem:[#allocation2 + $0xa0] sm:$0xff] %v2359_v0  ;;  %326 = vst [vmem:[#allocation2 + $0xa8] sm:$0xff] %v2359_v0 }
  0x46   : > { %327 = vst [vmem:[#allocation2 + $0xb0] sm:$0xff] %v2359_v0  ;;  %328 = vst [vmem:[#allocation2 + $0xb8] sm:$0xff] %v2359_v0 }
  0x47   : > { %329 = vst [vmem:[#allocation2 + $0xc0] sm:$0xff] %v2359_v0  ;;  %330 = vst [vmem:[#allocation2 + $0xc8] sm:$0xff] %v2359_v0 }
  0x48   : > { %331 = vst [vmem:[#allocation2 + $0xd0] sm:$0xff] %v2359_v0  ;;  %332 = vst [vmem:[#allocation2 + $0xd8] sm:$0xff] %v2359_v0 }
  0x49   : > { %333 = vst [vmem:[#allocation2 + $0xe0] sm:$0xff] %v2359_v0  ;;  %334 = vst [vmem:[#allocation2 + $0xe8] sm:$0xff] %v2359_v0 }
  0x4a   : > { %335 = vst [vmem:[#allocation2 + $0xf0] sm:$0xff] %v2359_v0  ;;  %336 = vst [vmem:[#allocation2 + $0xf8] sm:$0xff] %v2359_v0 }
  0x4b   : > { %337 = vst [vmem:[#allocation2 + $0x100] sm:$0xff] %v2359_v0  ;;  %338 = vst [vmem:[#allocation2 + $0x108] sm:$0xff] %v2359_v0 }
  0x4c   : > { %339 = vst [vmem:[#allocation2 + $0x110] sm:$0xff] %v2359_v0  ;;  %340 = vst [vmem:[#allocation2 + $0x118] sm:$0xff] %v2359_v0 }
  0x4d   : > { %341 = vst [vmem:[#allocation2 + $0x120] sm:$0xff] %v2359_v0  ;;  %342 = vst [vmem:[#allocation2 + $0x128] sm:$0xff] %v2359_v0 }
  0x4e   : > { %343 = vst [vmem:[#allocation2 + $0x130] sm:$0xff] %v2359_v0  ;;  %344 = vst [vmem:[#allocation2 + $0x138] sm:$0xff] %v2359_v0 }
  0x4f   : > { %345 = vst [vmem:[#allocation2 + $0x140] sm:$0xff] %v2359_v0  ;;  %346 = vst [vmem:[#allocation2 + $0x148] sm:$0xff] %v2359_v0 }
  0x50   : > { %347 = vst [vmem:[#allocation2 + $0x150] sm:$0xff] %v2359_v0  ;;  %348 = vst [vmem:[#allocation2 + $0x158] sm:$0xff] %v2359_v0 }
  0x51   : > { %349 = vst [vmem:[#allocation2 + $0x160] sm:$0xff] %v2359_v0  ;;  %350 = vst [vmem:[#allocation2 + $0x168] sm:$0xff] %v2359_v0 }
  0x52   : > { %351 = vst [vmem:[#allocation2 + $0x170] sm:$0xff] %v2359_v0  ;;  %352 = vst [vmem:[#allocation2 + $0x178] sm:$0xff] %v2359_v0 }
  0x53 LB: >> { %s359_s10 = sadd.s32 %s2341_s30, %s2497_s21  ;;  %s2341_s30 = sphi %s2339_s30, %s358_s30  }
  0x54   : >> { %s360_s11 = sld [smem:[#allocation6 + %s359_s10]] }
  0x5a   : >> { %p1762_p13 = scmp.eq.s32.totalorder %s360_s11, 0 }
  0x5b   : >> { %s365_s12 = sshrl.u32 (!%p1762_p13), %s360_s11, 3  ;;  %s366_s20 = sand.u32 (!%p1762_p13), 7, %s360_s11  }
  0x5c   : >> { %364 = sbr.rel (%p1762_p13) target bundleno = 101 (0x65), region = 63  ;;  %s370_s13 = sshrl.u32 (!%p1762_p13), %s2341_s30, 3 }
  0x5d   : >> { %s367_s7 = smul.u32 (!%p1762_p13), 24, %s365_s12  ;;  %s371_s22 = sand.u32 (!%p1762_p13), 7, %s2341_s30  }
  0x5e   : >> { %s372_s0 = smul.u32 (!%p1762_p13), 24, %s370_s13 }
  0x5f   : >> { %s368_s26 = sadd.s32 (!%p1762_p13), %s367_s7, %s366_s20 }
  0x60   : >> { %s369_s18 = scalar_lea.vmem (!%p1762_p13), %s2815_s1, %s368_s26  ;;  %s373_s2 = sadd.s32 (!%p1762_p13), %s372_s0, %s371_s22 }
  0x61   : >> { %v393_v1 = vld [vmem:[%s369_s18] sm:$0x1]  ;;  %v395_v2 = vld [vmem:[%s369_s18 + $0x8] sm:$0x1]  ;;  %s374_s19 = scalar_lea.vmem [#allocation2], %s373_s2 }
  0x62   : >> { %394 = vst [vmem:[%s374_s19] sm:$0x1] %v393_v1  ;;  %396 = vst [vmem:[%s374_s19 + $0x8] sm:$0x1] %v395_v2  ;;  %v397_v3 = vld [vmem:[%s369_s18 + $0x10] sm:$0x1] }
  0x63   : >> { %398 = vst [vmem:[%s374_s19 + $0x10] sm:$0x1] %v397_v3 }
  0x64   : >> { %428 = vsyncadd [#allocation3], 48 }
  0x65 PF: >> { %s358_s30 = sadd.s32 1, %s2341_s30  }
  0x66   : >> { %p355_p0 = scmp.ge.s32.totalorder %s358_s30, 64  }
  0x67   : > { %s2515_s12 = smov (%p355_p0), 0  }
  0x68   : > { %357 = sbr.rel (!%p355_p0) target bundleno = 83 (0x53), region = 222 }
  0x6d LB: >> { %s2854_s21 = sld [smem:[#allocation24_spill]]  ;;  %s2521_s2 = sand.u32 1, %s2345_s12  ;;  %s2345_s12 = sphi %s2515_s12, %s2860_s12  }
  0x6e   : >> { %s1763_s7 = sshll.u32 %s2345_s12, 6  ;;  %s2347_s19 = smov 0  }
  0x73   : >> { %s437_s0 = sadd.s32 %s1763_s7, %s2854_s21 }
  0x74 LB: >>> { %s444_s22 = sadd.s32 %s2349_s19, %s437_s0  ;;  %s450_s10 = scalar_lea.sflag [#allocation3], %s2521_s2  ;;  %s2349_s19 = sphi %s2347_s19, %s443_s19  }
  0x75   : >>> { %s445_s30 = sld [smem:[#allocation6 + %s444_s22]] }
  0x7b   : >>> { %p2098_p1 = scmp.ne.s32.totalorder %s445_s30, 0 }
  0x7d   : >>> { %2316 = dma.done.wait (%p2098_p1), %s450_s10, 48 }
  0x7e   : >>> { %2318 = vsyncadd (%p2098_p1), %s450_s10, 4294967248  ;;  %s443_s19 = sadd.s32 1, %s2349_s19  }
  0x7f   : >>> { %p440_p2 = scmp.ge.s32.totalorder %s443_s19, 64  }
  0x80   : >> { %s2828_s11 = sadd.s32 (%p440_p2), 1, %s2345_s12  }
  0x81   : >> { %442 = sbr.rel (!%p440_p2) target bundleno = 116 (0x74), region = 233  ;;  %p2529_p3 = scmp.ge.s32.totalorder (%p440_p2), %s2828_s11, 16 }
  0x86   : >> { %458 = sbr.rel (%p2529_p3) target bundleno = 173 (0xad), region = 115  ;;  %s2536_s26 = sadd.s32 (!%p2529_p3), 64, %s1763_s7 }
  0x87   : >> { %s2540_s27 = smov (!%p2529_p3), 0  }
  0x8b LB: >>> { %s2856_s21 = sld [smem:[#allocation24_spill]]  ;;  %s2353_s27 = sphi %s2540_s27, %s467_s27  }
  0x91   : >>> { %s2857_s25 = sadd.s32 %s2536_s26, %s2856_s21 }
  0x92   : >>> { %s468_s18 = sadd.s32 %s2353_s27, %s2857_s25 }
  0x93   : >>> { %s469_s0 = sld [smem:[#allocation6 + %s468_s18]] }
  0x99   : >>> { %p1767_p4 = scmp.eq.s32.totalorder %s469_s0, 0 }
  0x9a   : >>> { %s474_s19 = sshrl.u32 (!%p1767_p4), %s469_s0, 3  ;;  %s475_s22 = sand.u32 (!%p1767_p4), 7, %s469_s0  }
  0x9b   : >>> { %473 = sbr.rel (%p1767_p4) target bundleno = 165 (0xa5), region = 126  ;;  %s479_s30 = sshrl.u32 (!%p1767_p4), %s2353_s27, 3 }
  0x9c   : >>> { %s476_s7 = smul.u32 (!%p1767_p4), 24, %s474_s19  ;;  %s480_s10 = sand.u32 (!%p1767_p4), 7, %s2353_s27  }
  0x9d   : >>> { %s481_s11 = smul.u32 (!%p1767_p4), 24, %s479_s30  ;;  %s2858_s24 = ssub.s32 (!%p1767_p4), 1, %s2521_s2 }
  0x9e   : >>> { %s477_s13 = sadd.s32 (!%p1767_p4), %s476_s7, %s475_s22  ;;  %s483_s14 = smul.u32 (!%p1767_p4), 192, %s2858_s24 }
  0x9f   : >>> { %s478_s23 = scalar_lea.vmem (!%p1767_p4), %s2815_s1, %s477_s13  ;;  %s482_s21 = sadd.s32 (!%p1767_p4), %s481_s11, %s480_s10 }
  0xa0   : >>> { %s484_s25 = sadd.s32 %s483_s14, %s482_s21  ;;  %v505_v4 = vld [vmem:[%s478_s23] sm:$0x1]  ;;  %v507_v5 = vld [vmem:[%s478_s23 + $0x8] sm:$0x1]  ;;  %v509_v6 = vld [vmem:[%s478_s23 + $0x10] sm:$0x1]  ;;  %s2859_s0 = smov %s2858_s24 }
  0xa1   : >>> { %s485_s18 = scalar_lea.vmem [#allocation2], %s484_s25  ;;  %s486_s19 = scalar_lea.sflag [#allocation3], %s2859_s0 }
  0xa2   : >>> { %506 = vst [vmem:[%s485_s18] sm:$0x1] %v505_v4  ;;  %508 = vst [vmem:[%s485_s18 + $0x8] sm:$0x1] %v507_v5 }
  0xa3   : >>> { %510 = vst [vmem:[%s485_s18 + $0x10] sm:$0x1] %v509_v6 }
  0xa4   : >>> { %540 = vsyncadd %s486_s19, 48 }
  0xa5 PF: >>> { %s467_s27 = sadd.s32 1, %s2353_s27  }
  0xa6   : >>> { %p464_p5 = scmp.ge.s32.totalorder %s467_s27, 64  }
  0xa8   : >> { %466 = sbr.rel (!%p464_p5) target bundleno = 139 (0x8b), region = 244 }
  0xad PF: >> { %s1825_s9 = smul.u32 192, %s2521_s2  ;;  %v2360_v7 = vmov 0.0   ;;  %vm2361_vm0 = vmmov 0   ;;  %s1768_s16 = sshll.u32 %s2345_s12, 3  ;;  %vm571_vm1 = vcmask 523264   ;;  %v2173_v37 = vld [vmem:[%s2817_s3 + $0x78] sm:$0xff] (%p2529_p3)  }
  0xae   : >> { %1949 = vmatprep.subr.mxu1 %v2360_v7  ;;  %1965 = vmatprep.mubr.msk.f32.mxu1 %vm2361_vm0, %v2360_v7  ;;  %s542_s23 = scalar_lea.vmem %s2506_s28, %s1768_s16  ;;  %s716_s24 = sshra.s32 %s1768_s16, 3  ;;  %v2174_v38 = vld [vmem:[%s2817_s3 + $0x38] sm:$0xff] (%p2529_p3)   ;;  %v2175_v39 = vld [vmem:[%s2817_s3 + $0x70] sm:$0xff] (%p2529_p3)   ;;  %v2178_v42 = vld [vmem:[%s2817_s3 + $0x68] sm:$0xff] (%p2529_p3)  }
  0xaf   : >> { %639 = vmatprep.mubr.f32.mxu0 %v2360_v7  ;;  %s2556_s14 = scalar_lea.vmem [#allocation2], %s1825_s9  ;;  %v543_v32 = vld [vmem:[%s542_s23] sm:$0xff]  ;;  %s1826_s21 = smul.u32 24, %s716_s24  ;;  %v2176_v40 = vld [vmem:[%s2817_s3 + $0xb8] sm:$0xff] (%p2529_p3)   ;;  %v2177_v41 = vld [vmem:[%s2817_s3 + $0x30] sm:$0xff] (%p2529_p3)  }
  0xb0   : >> { %v569_v8 = vld [vmem:[%s2556_s14 + $0xb0] sm:$0xff]  ;;  %v570_v9 = vld [vmem:[%s2556_s14 + $0xb8] sm:$0xff]  ;;  %v568_v10 = vld [vmem:[%s2556_s14 + $0xa8] sm:$0xff]  ;;  %s2860_s12 = sadd.s32 1, %s2345_s12   ;;  %s1827_s22 = sshll.u32 (%p2529_p3), %s2439_s17, 11 }
  0xb1   : >> { %591 = vmatprep.subr.mxu0 %v569_v8  ;;  %1950 = vmatpush3.msra.mxu1 %v570_v9  ;;  %v566_v11 = vld [vmem:[%s2556_s14 + $0x98] sm:$0xff]  ;;  %v567_v12 = vld [vmem:[%s2556_s14 + $0xa0] sm:$0xff]  ;;  %v565_v13 = vld [vmem:[%s2556_s14 + $0x90] sm:$0xff]  ;;  %s720_s2 = scalar_lea.vmem [#allocation4], %s1826_s21  ;;  %s1603_s7 = sshll.u32 (%p2529_p3), %s2509_s29, 4  ;;  %s2768_s7 = int_to_ptr.vmem [resolvable:$true] %s1603_s7 }
  0xb2   : >> { %592 = vmatpush1.msra.mxu0 %v568_v10  ;;  %1951 = vmatprep.subr.mxu1 %v2360_v7  ;;  %v563_v14 = vld [vmem:[%s2556_s14 + $0x80] sm:$0xff]  ;;  %v564_v15 = vld [vmem:[%s2556_s14 + $0x88] sm:$0xff]  ;;  %v562_v16 = vld [vmem:[%s2556_s14 + $0x78] sm:$0xff]  ;;  %s2862_s28 = sld [smem:[#allocation27_spill]] (%p2529_p3)  ;;  %s2863_s10 = sand.u32 (%p2529_p3), 1, %s2329_s15  }
  0xb3   : >> { %593 = vmatprep.subr.mxu0 %v566_v11  ;;  %1952 = vmatpush3.msra.mxu1 %v567_v12  ;;  %v560_v17 = vld [vmem:[%s2556_s14 + $0x68] sm:$0xff]  ;;  %v561_v18 = vld [vmem:[%s2556_s14 + $0x70] sm:$0xff]  ;;  %v559_v19 = vld [vmem:[%s2556_s14 + $0x60] sm:$0xff]  ;;  %s2774_s17 = scalar_lea.sflag (%p2529_p3), [#allocation9], %s2863_s10  ;;  %s2251_s18 = scalar_lea.vmem (%p2529_p3), %s2768_s7, 2048 }
  0xb4   : >> { %594 = vmatpush1.msra.mxu0 %v565_v13  ;;  %1953 = vmatprep.subr.mxu1 %v2360_v7  ;;  %v557_v20 = vld [vmem:[%s2556_s14 + $0x50] sm:$0xff]  ;;  %v558_v21 = vld [vmem:[%s2556_s14 + $0x58] sm:$0xff]  ;;  %v556_v22 = vld [vmem:[%s2556_s14 + $0x48] sm:$0xff]  ;;  %p2252_p6 = scmp.ne.s32.totalorder (%p2529_p3), %s2768_s7, %s2251_s18  ;;  %s2362_s0 = smov (%p2529_p3), [#allocation10]  }
  0xb5   : >> { %595 = vmatprep.subr.mxu0 %v563_v14  ;;  %1954 = vmatpush3.msra.mxu1 %v564_v15  ;;  %v554_v23 = vld [vmem:[%s2556_s14 + $0x38] sm:$0xff]  ;;  %v555_v24 = vld [vmem:[%s2556_s14 + $0x40] sm:$0xff]  ;;  %v553_v25 = vld [vmem:[%s2556_s14 + $0x30] sm:$0xff]  ;;  %s2255_s19 = sshll.u32 (%p2529_p3), %s2362_s0, 4  ;;  %s2256_s19 = int_to_ptr.vmem [resolvable:$false] %s2255_s19 }
  0xb6   : >> { %596 = vmatpush1.msra.mxu0 %v562_v16  ;;  %1955 = vmatprep.subr.mxu1 %v2360_v7  ;;  %v551_v26 = vld [vmem:[%s2556_s14 + $0x20] sm:$0xff]  ;;  %v552_v27 = vld [vmem:[%s2556_s14 + $0x28] sm:$0xff]  ;;  %v550_v28 = vld [vmem:[%s2556_s14 + $0x18] sm:$0xff]  ;;  %p2253_p7 = pnand (%p2529_p3), %p2252_p6, %p2456_p10  ;;  %s2257_s9 = scalar_lea.vmem (%p2529_p3), %s2256_s19, 4096 }
  0xb7   : >> { %597 = vmatprep.subr.mxu0 %v560_v17  ;;  %1956 = vmatpush3.msra.mxu1 %v561_v18  ;;  %v548_v29 = vld [vmem:[%s2556_s14 + $0x8] sm:$0xff]  ;;  %v549_v30 = vld [vmem:[%s2556_s14 + $0x10] sm:$0xff]  ;;  %v547_v31 = vld [vmem:[%s2556_s14] sm:$0xff]  ;;  %p2258_p9 = scmp.lt.s32.totalorder (%p2529_p3), %s2768_s7, %s2256_s19  ;;  %p2259_p12 = scmp.lt.s32.totalorder (%p2529_p3), %s2257_s9, %s2251_s18 }
  0xb8   : >> { %598 = vmatpush1.msra.mxu0 %v559_v19  ;;  %1957 = vmatprep.subr.mxu1 %v2360_v7  ;;  %v2179_v43 = vld [vmem:[%s2817_s3 + $0xb0] sm:$0xff] (%p2529_p3)   ;;  %v2180_v44 = vld [vmem:[%s2817_s3 + $0x28] sm:$0xff] (%p2529_p3)   ;;  %v2181_v45 = vld [vmem:[%s2817_s3 + $0x60] sm:$0xff] (%p2529_p3)   ;;  %s2766_s20 = scalar_lea.hbm (%p2529_p3), %s2862_s28, %s1827_s22  ;;  %p2254_p8 = pneg (%p2529_p3), %p2253_p7 }
  0xb9   : >> { %599 = vmatprep.subr.mxu0 %v557_v20  ;;  %1958 = vmatpush3.msra.mxu1 %v558_v21  ;;  %v2182_v46 = vld [vmem:[%s2817_s3 + $0xa8] sm:$0xff] (%p2529_p3)   ;;  %v2183_v47 = vld [vmem:[%s2817_s3 + $0x20] sm:$0xff] (%p2529_p3)   ;;  %v2184_v48 = vld [vmem:[%s2817_s3 + $0x58] sm:$0xff] (%p2529_p3)   ;;  %p2260_p11 = por (%p2529_p3), %p2259_p12, %p2258_p9 }
  0xba   : >> { %600 = vmatpush1.msra.mxu0 %v556_v22  ;;  %1959 = vmatprep.subr.mxu1 %v2360_v7  ;;  %v2185_v49 = vld [vmem:[%s2817_s3 + $0xa0] sm:$0xff] (%p2529_p3)   ;;  %v2186_v50 = vld [vmem:[%s2817_s3 + $0x18] sm:$0xff] (%p2529_p3)   ;;  %v2187_v52 = vld [vmem:[%s2817_s3 + $0x50] sm:$0xff] (%p2529_p3)  }
  0xbb   : >> { %601 = vmatprep.subr.mxu0 %v554_v23  ;;  %1960 = vmatpush3.msra.mxu1 %v555_v24  ;;  %v2188_v51 = vld [vmem:[%s2817_s3 + $0x98] sm:$0xff] (%p2529_p3)   ;;  %v2189_v53 = vld [vmem:[%s2817_s3 + $0x10] sm:$0xff] (%p2529_p3)   ;;  %v2190_v55 = vld [vmem:[%s2817_s3 + $0x48] sm:$0xff] (%p2529_p3)   ;;  %p2261_p13 = pnand (%p2529_p3), %p2260_p11, %p2254_p8 }
  0xbc   : >> { %602 = vmatpush1.msra.mxu0 %v553_v25  ;;  %1961 = vmatprep.subr.mxu1 %v2360_v7  ;;  %v2191_v54 = vld [vmem:[%s2817_s3 + $0x90] sm:$0xff] (%p2529_p3)   ;;  %v2192_v56 = vld [vmem:[%s2817_s3 + $0x8] sm:$0xff] (%p2529_p3)   ;;  %v2193_v60 = vld [vmem:[%s2817_s3 + $0x40] sm:$0xff] (%p2529_p3)  }
  0xbd   : >> { %603 = vmatprep.subr.mxu0 %v551_v26  ;;  %1962 = vmatpush3.msra.mxu1 %v552_v27  ;;  %v2194_v57 = vld [vmem:[%s2817_s3 + $0x88] sm:$0xff] (%p2529_p3)   ;;  %v2195_v0 = vld [vmem:[%s2817_s3] sm:$0xff] (%p2529_p3)   ;;  %v2197_v25 = vld [vmem:[%s2819_s5 + $0x38] sm:$0xff] (%p2529_p3)  }
  0xbe   : >> { %604 = vmatpush1.msra.mxu0 %v550_v28  ;;  %1963 = vmatprep.subr.mxu1 %v2360_v7  ;;  %v2196_v4 = vld [vmem:[%s2817_s3 + $0x80] sm:$0xff] (%p2529_p3)  }
  0xbf   : >> { %605 = vmatprep.subr.mxu0 %v548_v29  ;;  %1964 = vmatpush3.msra.mxu1 %v549_v30  ;;  %v2198_v29 = vld [vmem:[%s2819_s5 + $0x30] sm:$0xff] (%p2529_p3)  }
  0xc0   : >> { %606 = vmatpush1.msra.mxu0 %v547_v31  ;;  %1966 = vmatmul.mubr.msk.f32.vlgmr.msra.gmra.mxu1 %vm571_vm1, %v543_v32 }
  0xc1   : >> { %1770 = vmatmul.mubr.msk.f32.vlgmr.msra.gmra.mxu0 %vm571_vm1, %v543_v32  ;;  %1837 = vmatprep.subr.bf16.mxu0 (%p2529_p3), %v2173_v37 }
  0xc2   : > { %1838 = vmatpush3.bf16.msra.mxu0 (%p2529_p3), %v2174_v38  ;;  %1968 = vmatprep.subr.bf16.mxu1 (%p2529_p3), %v2176_v40 }
  0xc3   : > { %1839 = vmatprep.subr.bf16.mxu0 (%p2529_p3), %v2175_v39  ;;  %1969 = vmatpush3.bf16.msra.mxu1 (%p2529_p3), %v2176_v40 }
  0xc4   : > { %1970 = vmatprep.subr.bf16.mxu1 (%p2529_p3), %v2179_v43 }
  0xc6   : > { %1840 = vmatpush3.bf16.msra.mxu0 (%p2529_p3), %v2177_v41 }
  0xc7   : > { %1841 = vmatprep.subr.bf16.mxu0 (%p2529_p3), %v2178_v42  ;;  %1971 = vmatpush3.bf16.msra.mxu1 (%p2529_p3), %v2179_v43 }
  0xc8   : > { %1972 = vmatprep.subr.bf16.mxu1 (%p2529_p3), %v2182_v46 }
  0xca   : > { %1842 = vmatpush3.bf16.msra.mxu0 (%p2529_p3), %v2180_v44 }
  0xcb   : > { %1843 = vmatprep.subr.bf16.mxu0 (%p2529_p3), %v2181_v45  ;;  %1973 = vmatpush3.bf16.msra.mxu1 (%p2529_p3), %v2182_v46 }
  0xcc   : > { %1974 = vmatprep.subr.bf16.mxu1 (%p2529_p3), %v2185_v49 }
  0xce   : > { %1844 = vmatpush3.bf16.msra.mxu0 (%p2529_p3), %v2183_v47 }
  0xcf   : > { %1845 = vmatprep.subr.bf16.mxu0 (%p2529_p3), %v2184_v48  ;;  %1975 = vmatpush3.bf16.msra.mxu1 (%p2529_p3), %v2185_v49 }
  0xd0   : > { %1976 = vmatprep.subr.bf16.mxu1 (%p2529_p3), %v2188_v51 }
  0xd2   : > { %1846 = vmatpush3.bf16.msra.mxu0 (%p2529_p3), %v2186_v50 }
  0xd3   : > { %1847 = vmatprep.subr.bf16.mxu0 (%p2529_p3), %v2187_v52  ;;  %1977 = vmatpush3.bf16.msra.mxu1 (%p2529_p3), %v2188_v51 }
  0xd4   : > { %1978 = vmatprep.subr.bf16.mxu1 (%p2529_p3), %v2191_v54 }
  0xd6   : > { %1848 = vmatpush3.bf16.msra.mxu0 (%p2529_p3), %v2189_v53 }
  0xd7   : > { %1849 = vmatprep.subr.bf16.mxu0 (%p2529_p3), %v2190_v55  ;;  %1979 = vmatpush3.bf16.msra.mxu1 (%p2529_p3), %v2191_v54 }
  0xd8   : > { %1980 = vmatprep.subr.bf16.mxu1 (%p2529_p3), %v2194_v57 }
  0xda   : > { %1850 = vmatpush3.bf16.msra.mxu0 (%p2529_p3), %v2192_v56 }
  0xdb   : > { %1851 = vmatprep.subr.bf16.mxu0 (%p2529_p3), %v2193_v60  ;;  %1981 = vmatpush3.bf16.msra.mxu1 (%p2529_p3), %v2194_v57 }
  0xdc   : > { %1982 = vmatprep.subr.bf16.mxu1 (%p2529_p3), %v2196_v4 }
  0xde   : > { %1852 = vmatpush3.bf16.msra.mxu0 (%p2529_p3), %v2195_v0 }
  0xdf   : > { %1983 = vmatpush3.bf16.msra.mxu1 (%p2529_p3), %v2196_v4 }
  0xe0   : > { %2000 = vmatprep.subr.bf16.mxu1 (%p2529_p3), %v2197_v25 }
 0x180   : >> { %v712_v33 = vpop.f32.mrf.mxu1  ;;  %433 = sbr.rel (!%p2529_p3) target bundleno = 109 (0x6d), region = 255 }
 0x181   : >> { %723 = vst [vmem:[%s720_s2 + $0x10] sm:$0xff] %v712_v33  ;;  %v641_v34 = vpop.f32.mrf.mxu0 }
 0x182   : >> { %721 = vst [vmem:[%s720_s2] sm:$0xff] %v641_v34  ;;  %v1967_v35 = vpop.f32.mrf.mxu1 }
 0x183   : >> { %v643_v36 = vpop.f32.mrf.mxu0 }
 0x184   : >> { %722 = vst [vmem:[%s720_s2 + $0x8] sm:$0xff] %v643_v36 }
 0x18b   : > { %v725_v58 = vld [vmem:[#allocation4 + $0x8] sm:$0xff]  ;;  %v728_v59 = vld [vmem:[#allocation4 + $0x20] sm:$0xff]  ;;  %v726_v62 = vld [vmem:[#allocation4 + $0x10] sm:$0xff] }
 0x18c   : > { %v773_v61 = vpack.c.bf16 %v728_v59, %v725_v58  ;;  %v729_v63 = vld [vmem:[#allocation4 + $0x28] sm:$0xff]  ;;  %v724_v2 = vld [vmem:[#allocation4] sm:$0xff]  ;;  %v727_v3 = vld [vmem:[#allocation4 + $0x18] sm:$0xff] }
 0x18d   : > { %v774_v1 = vpack.c.bf16 %v729_v63, %v726_v62  ;;  %v731_v5 = vld [vmem:[#allocation4 + $0x38] sm:$0xff]  ;;  %v734_v6 = vld [vmem:[#allocation4 + $0x50] sm:$0xff]  ;;  %v772_v7 = vpack.c.bf16 %v727_v3, %v724_v2  ;;  %v732_v8 = vld [vmem:[#allocation4 + $0x40] sm:$0xff] }
 0x18e   : > { %1027 = vmatprep.mubr.bf16.mxu0 %v773_v61  ;;  %v735_v9 = vld [vmem:[#allocation4 + $0x58] sm:$0xff]  ;;  %v776_v10 = vpack.c.bf16 %v734_v6, %v731_v5  ;;  %v738_v11 = vld [vmem:[#allocation4 + $0x70] sm:$0xff]  ;;  %v741_v12 = vld [vmem:[#allocation4 + $0x88] sm:$0xff] }
 0x18f   : > { %1984 = vmatprep.mubr.bf16.mxu1 %v774_v1  ;;  %v777_v13 = vpack.c.bf16 %v735_v9, %v732_v8  ;;  %1028 = vmatmul.mubr.bf16.vlgmr.msra.gmra.mxu0 %v772_v7  ;;  %v780_v14 = vpack.c.bf16 %v741_v12, %v738_v11  ;;  %v730_v15 = vld [vmem:[#allocation4 + $0x30] sm:$0xff]  ;;  %v733_v16 = vld [vmem:[#allocation4 + $0x48] sm:$0xff]  ;;  %v740_v18 = vld [vmem:[#allocation4 + $0x80] sm:$0xff] }
 0x190   : > { %1035 = vmatprep.mubr.bf16.mxu0 %v776_v10  ;;  %v737_v17 = vld [vmem:[#allocation4 + $0x68] sm:$0xff]  ;;  %v775_v19 = vpack.c.bf16 %v733_v16, %v730_v15  ;;  %v744_v20 = vld [vmem:[#allocation4 + $0xa0] sm:$0xff]  ;;  %v747_v21 = vld [vmem:[#allocation4 + $0xb8] sm:$0xff] }
 0x191   : > { %1985 = vmatmul.mubr.bf16.vlgmr.msra.gmra.mxu1 %v777_v13  ;;  %v779_v22 = vpack.c.bf16 %v740_v18, %v737_v17  ;;  %v750_v23 = vld [vmem:[#allocation4 + $0xd0] sm:$0xff]  ;;  %v753_v24 = vld [vmem:[#allocation4 + $0xe8] sm:$0xff]  ;;  %v736_v26 = vld [vmem:[#allocation4 + $0x60] sm:$0xff]  ;;  %v783_v28 = vpack.c.bf16 %v747_v21, %v744_v20 }
 0x192   : > { %1988 = vmatprep.mubr.bf16.mxu1 %v780_v14  ;;  %v739_v27 = vld [vmem:[#allocation4 + $0x78] sm:$0xff]  ;;  %v746_v31 = vld [vmem:[#allocation4 + $0xb0] sm:$0xff]  ;;  %v786_v32 = vpack.c.bf16 %v753_v24, %v750_v23  ;;  %2001 = vmatpush3.bf16.msra.mxu1 %v2197_v25  ;;  %v756_v33 = vld [vmem:[#allocation4 + $0x100] sm:$0xff] }
 0x193   : > { %v743_v30 = vld [vmem:[#allocation4 + $0x98] sm:$0xff]  ;;  %2002 = vmatprep.subr.bf16.mxu1 %v2198_v29  ;;  %v762_v35 = vld [vmem:[#allocation4 + $0x130] sm:$0xff]  ;;  %v765_v36 = vld [vmem:[#allocation4 + $0x148] sm:$0xff]  ;;  %v778_v37 = vpack.c.bf16 %v739_v27, %v736_v26 }
 0x194   : > { %v759_v34 = vld [vmem:[#allocation4 + $0x118] sm:$0xff]  ;;  %v782_v38 = vpack.c.bf16 %v746_v31, %v743_v30  ;;  %v792_v40 = vpack.c.bf16 %v765_v36, %v762_v35  ;;  %v742_v41 = vld [vmem:[#allocation4 + $0x90] sm:$0xff]  ;;  %v745_v42 = vld [vmem:[#allocation4 + $0xa8] sm:$0xff] }
 0x195   : > { %v789_v39 = vpack.c.bf16 %v759_v34, %v756_v33  ;;  %v749_v43 = vld [vmem:[#allocation4 + $0xc8] sm:$0xff]  ;;  %v752_v44 = vld [vmem:[#allocation4 + $0xe0] sm:$0xff]  ;;  %v781_v45 = vpack.c.bf16 %v745_v42, %v742_v41  ;;  %v771_v47 = vld [vmem:[#allocation4 + $0x178] sm:$0xff] }
 0x196   : > { %2003 = vmatpush3.bf16.msra.mxu1 %v2198_v29  ;;  %v768_v46 = vld [vmem:[#allocation4 + $0x160] sm:$0xff]  ;;  %v785_v48 = vpack.c.bf16 %v752_v44, %v749_v43  ;;  %v751_v51 = vld [vmem:[#allocation4 + $0xd8] sm:$0xff]  ;;  %v758_v53 = vld [vmem:[#allocation4 + $0x110] sm:$0xff] }
 0x197   : > { %1036 = vmatmul.mubr.bf16.gmra.mxu0 %v775_v19  ;;  %v795_v49 = vpack.c.bf16 %v771_v47, %v768_v46  ;;  %v748_v50 = vld [vmem:[#allocation4 + $0xc0] sm:$0xff]  ;;  %v755_v52 = vld [vmem:[#allocation4 + $0xf8] sm:$0xff]  ;;  %v754_v56 = vld [vmem:[#allocation4 + $0xf0] sm:$0xff] }
 0x198   : > { %1043 = vmatprep.mubr.bf16.mxu0 %v779_v22  ;;  %v784_v54 = vpack.c.bf16 %v751_v51, %v748_v50  ;;  %v788_v55 = vpack.c.bf16 %v758_v53, %v755_v52  ;;  %v757_v57 = vld [vmem:[#allocation4 + $0x108] sm:$0xff]  ;;  %v764_v59 = vld [vmem:[#allocation4 + $0x140] sm:$0xff]  ;;  %v763_v63 = vld [vmem:[#allocation4 + $0x138] sm:$0xff] }
 0x199   : > { %1989 = vmatmul.mubr.bf16.gmra.mxu1 %v783_v28  ;;  %v761_v58 = vld [vmem:[#allocation4 + $0x128] sm:$0xff]  ;;  %v787_v60 = vpack.c.bf16 %v757_v57, %v754_v56  ;;  %v760_v62 = vld [vmem:[#allocation4 + $0x120] sm:$0xff]  ;;  %v767_v0 = vld [vmem:[#allocation4 + $0x158] sm:$0xff] }
 0x19a   : > { %1992 = vmatprep.mubr.bf16.mxu1 %v786_v32  ;;  %v791_v61 = vpack.c.bf16 %v764_v59, %v761_v58  ;;  %v770_v1 = vld [vmem:[#allocation4 + $0x170] sm:$0xff]  ;;  %v790_v2 = vpack.c.bf16 %v763_v63, %v760_v62  ;;  %v769_v5 = vld [vmem:[#allocation4 + $0x168] sm:$0xff]  ;;  %v2200_v8 = vld [vmem:[%s2819_s5 + $0x20] sm:$0xff]  }
 0x19b   : > { %v794_v3 = vpack.c.bf16 %v770_v1, %v767_v0  ;;  %v766_v4 = vld [vmem:[#allocation4 + $0x150] sm:$0xff]  ;;  %v2199_v7 = vld [vmem:[%s2819_s5 + $0x28] sm:$0xff]   ;;  %v2201_v9 = vld [vmem:[%s2819_s5 + $0x18] sm:$0xff]  }
 0x19c   : > { %v793_v6 = vpack.c.bf16 %v769_v5, %v766_v4  ;;  %2004 = vmatprep.subr.bf16.mxu1 %v2199_v7  ;;  %v2202_v10 = vld [vmem:[%s2819_s5 + $0x10] sm:$0xff]   ;;  %v2203_v11 = vld [vmem:[%s2819_s5 + $0x8] sm:$0xff]   ;;  %v2204_v12 = vld [vmem:[%s2819_s5] sm:$0xff]  }
 0x19d   : > { %2005 = vmatpush3.bf16.msra.mxu1 %v2199_v7  ;;  %v2690_v13 = vld [vmem:[#allocation7 + $0x38] sm:$0xff]   ;;  %v2692_v14 = vld [vmem:[#allocation7 + $0x30] sm:$0xff]   ;;  %v2698_v15 = vld [vmem:[#allocation7 + $0x28] sm:$0xff]  }
 0x19e   : > { %2006 = vmatprep.subr.bf16.mxu1 %v2200_v8  ;;  %2032 = vmatprep.subr.bf16.mxu0 %v2690_v13  ;;  %v2702_v16 = vld [vmem:[#allocation7 + $0x20] sm:$0xff]   ;;  %v2706_v17 = vld [vmem:[#allocation7 + $0x18] sm:$0xff]  }
 0x19f   : > { %1044 = vmatmul.mubr.bf16.gmra.mxu0 %v778_v37  ;;  %v2714_v20 = vld [vmem:[%s2818_s4] ss:$0 sm:$0xff] }
 0x1a0   : > { %1051 = vmatprep.mubr.bf16.mxu0 %v782_v38  ;;  %2033 = vmatpush3.bf16.msra.mxu0 %v2690_v13 }
 0x1a1   : > { %1993 = vmatmul.mubr.bf16.gmra.mxu1 %v789_v39  ;;  %2034 = vmatprep.subr.bf16.mxu0 %v2692_v14 }
 0x1a2   : > { %1996 = vmatprep.mubr.bf16.mxu1 %v792_v40  ;;  %2007 = vmatpush3.bf16.msra.mxu1 %v2200_v8 }
 0x1a3   : > { %2008 = vmatprep.subr.bf16.mxu1 %v2201_v9 }
 0x1a4   : > { %2035 = vmatpush3.bf16.msra.mxu0 %v2692_v14 }
 0x1a5   : > { %2036 = vmatprep.subr.bf16.mxu0 %v2698_v15 }
 0x1a6   : > { %2009 = vmatpush3.bf16.msra.mxu1 %v2201_v9 }
 0x1a7   : > { %1052 = vmatmul.mubr.bf16.gmra.mxu0 %v781_v45  ;;  %2010 = vmatprep.subr.bf16.mxu1 %v2202_v10 }
 0x1a8   : > { %1059 = vmatprep.mubr.bf16.mxu0 %v785_v48  ;;  %2037 = vmatpush3.bf16.msra.mxu0 %v2698_v15 }
 0x1a9   : > { %1997 = vmatmul.mubr.bf16.gmra.mxu1 %v795_v49  ;;  %2038 = vmatprep.subr.bf16.mxu0 %v2702_v16 }
 0x1aa   : > { %2011 = vmatpush3.bf16.msra.mxu1 %v2202_v10 }
 0x1ab   : > { %2012 = vmatprep.subr.bf16.mxu1 %v2203_v11 }
 0x1ac   : > { %2039 = vmatpush3.bf16.msra.mxu0 %v2702_v16 }
 0x1ad   : > { %2040 = vmatprep.subr.bf16.mxu0 %v2706_v17 }
 0x1ae   : > { %2013 = vmatpush3.bf16.msra.mxu1 %v2203_v11 }
 0x1af   : > { %1060 = vmatmul.mubr.bf16.gmra.mxu0 %v784_v54  ;;  %2014 = vmatprep.subr.bf16.mxu1 %v2204_v12 }
 0x1b0   : > { %1067 = vmatprep.mubr.bf16.mxu0 %v788_v55  ;;  %2041 = vmatpush3.bf16.msra.mxu0 %v2706_v17 }
 0x1b2   : > { %2015 = vmatpush3.bf16.msra.mxu1 %v2204_v12 }
 0x1b3   : > { %2064 = vmatprep.subr.bf16.mxu1 %v2690_v13 }
 0x1b7   : > { %1068 = vmatmul.mubr.bf16.gmra.mxu0 %v787_v60 }
 0x1b8   : > { %1075 = vmatprep.mubr.bf16.mxu0 %v791_v61 }
 0x1bf   : > { %1076 = vmatmul.mubr.bf16.gmra.mxu0 %v790_v2 }
 0x1c0   : > { %1083 = vmatprep.mubr.bf16.mxu0 %v794_v3 }
 0x1c7   : > { %1084 = vmatmul.mubr.bf16.gmra.mxu0 %v793_v6 }
 0x24f   : > { %v1853_v18 = vpop.f32.mrf.mxu0 }
 0x251   : > { %v1854_v19 = vpop.f32.mrf.mxu0  ;;  %v1986_v22 = vpop.f32.mrf.mxu1 }
 0x252   : > { %v1855_v21 = vadd.f32 %v1854_v19, %v1853_v18 }
 0x253   : > { %v1856_v23 = vpop.f32.mrf.mxu0  ;;  %v1126_v25 = vpop.f32.mrf.mxu1 }
 0x254   : > { %v1030_v24 = vadd.f32 %v1855_v21, %v2714_v20 }
 0x255   : > { %v1857_v26 = vpop.f32.mrf.mxu0  ;;  %v1987_v28 = vpop.f32.mrf.mxu1 }
 0x256   : > { %v1858_v27 = vadd.f32 %v1857_v26, %v1856_v23  ;;  %v1127_v30 = vadd.f32 %v1126_v25, %v1030_v24 }
 0x257   : > { %v1859_v29 = vpop.f32.mrf.mxu0  ;;  %v1129_v32 = vpop.f32.mrf.mxu1 }
 0x258   : > { %v1033_v31 = vadd.f32 %v1858_v27, %v2714_v20  ;;  %v1189_v38 = vmax.f32 %v1127_v30, 0.0 }
 0x259   : > { %v1860_v33 = vpop.f32.mrf.mxu0  ;;  %v1990_v37 = vpop.f32.mrf.mxu1 }
 0x25a   : > { %v1861_v34 = vadd.f32 %v1860_v33, %v1859_v29  ;;  %v1130_v35 = vadd.f32 %v1129_v32, %v1033_v31 }
 0x25b   : > { %v1862_v36 = vpop.f32.mrf.mxu0  ;;  %v1142_v45 = vpop.f32.mrf.mxu1 }
 0x25c   : > { %v1038_v39 = vadd.f32 %v1861_v34, %v2714_v20  ;;  %v1190_v40 = vmax.f32 %v1130_v35, 0.0 }
 0x25d   : > { %v1863_v41 = vpop.f32.mrf.mxu0  ;;  %v1991_v52 = vpop.f32.mrf.mxu1 }
 0x25e   : > { %v1205_v42 = vpack.c.bf16 %v1190_v40, %v1189_v38  ;;  %v1864_v43 = vadd.f32 %v1863_v41, %v1862_v36  ;;  %v1135_v46 = vadd.f32 %v1986_v22, %v1038_v39 }
 0x25f   : > { %v1865_v44 = vpop.f32.mrf.mxu0  ;;  %v1145_v60 = vpop.f32.mrf.mxu1 }
 0x260   : > { %v1041_v47 = vadd.f32 %v1864_v43, %v2714_v20  ;;  %2016 = vmatprep.mubr.bf16.mxu1 %v1205_v42  ;;  %v1191_v53 = vmax.f32 %v1135_v46, 0.0 }
 0x261   : > { %v1866_v48 = vpop.f32.mrf.mxu0  ;;  %v1994_v3 = vpop.f32.mrf.mxu1 }
 0x262   : > { %v1138_v49 = vadd.f32 %v1987_v28, %v1041_v47  ;;  %v1867_v50 = vadd.f32 %v1866_v48, %v1865_v44 }
 0x263   : > { %v1868_v51 = vpop.f32.mrf.mxu0  ;;  %v1158_v11 = vpop.f32.mrf.mxu1 }
 0x264   : > { %v1192_v54 = vmax.f32 %v1138_v49, 0.0  ;;  %v1046_v55 = vadd.f32 %v1867_v50, %v2714_v20 }
 0x265   : > { %v1869_v56 = vpop.f32.mrf.mxu0  ;;  %v1995_v23 = vpop.f32.mrf.mxu1 }
 0x266   : > { %v1206_v57 = vpack.c.bf16 %v1192_v54, %v1191_v53  ;;  %v1870_v58 = vadd.f32 %v1869_v56, %v1868_v51  ;;  %v1143_v61 = vadd.f32 %v1142_v45, %v1046_v55 }
 0x267   : > { %v1871_v59 = vpop.f32.mrf.mxu0  ;;  %v1161_v30 = vpop.f32.mrf.mxu1 }
 0x268   : > { %2017 = vmatmul.mubr.bf16.vlgmr.msra.gmra.mxu1 %v1206_v57  ;;  %v1049_v62 = vadd.f32 %v1870_v58, %v2714_v20  ;;  %v1193_v4 = vmax.f32 %v1143_v61, 0.0 }
 0x269   : > { %v1872_v63 = vpop.f32.mrf.mxu0  ;;  %2072 = vmatpush3.bf16.msra.mxu1 %v2690_v13  ;;  %v1998_v36 = vpop.f32.mrf.mxu1 }
 0x26a   : > { %v1873_v0 = vadd.f32 %v1872_v63, %v1871_v59  ;;  %v1146_v1 = vadd.f32 %v1145_v60, %v1049_v62  ;;  %2065 = vmatprep.subr.bf16.mxu1 %v2692_v14 }
 0x26b   : > { %v1874_v2 = vpop.f32.mrf.mxu0  ;;  %v1174_v43 = vpop.f32.mrf.mxu1 }
 0x26c   : > { %v1054_v5 = vadd.f32 %v1873_v0, %v2714_v20  ;;  %v1194_v6 = vmax.f32 %v1146_v1, 0.0 }
 0x26d   : > { %v1875_v7 = vpop.f32.mrf.mxu0  ;;  %2073 = vmatpush3.bf16.msra.mxu1 %v2692_v14  ;;  %v1999_v49 = vpop.f32.mrf.mxu1 }
 0x26e   : > { %v1207_v8 = vpack.c.bf16 %v1194_v6, %v1193_v4  ;;  %v1876_v9 = vadd.f32 %v1875_v7, %v1874_v2  ;;  %2066 = vmatprep.subr.bf16.mxu1 %v2698_v15  ;;  %v1151_v12 = vadd.f32 %v1990_v37, %v1054_v5 }
 0x26f   : > { %v1877_v10 = vpop.f32.mrf.mxu0  ;;  %v1177_v57 = vpop.f32.mrf.mxu1 }
 0x270   : > { %v1057_v13 = vadd.f32 %v1876_v9, %v2714_v20  ;;  %2020 = vmatprep.mubr.bf16.mxu1 %v1207_v8  ;;  %v1195_v14 = vmax.f32 %v1151_v12, 0.0  ;;  %v2210_v12 = vld [vmem:[#allocation7 + $0x10] sm:$0xff]  }
 0x271   : > { %v1878_v18 = vpop.f32.mrf.mxu0  ;;  %2074 = vmatpush3.bf16.msra.mxu1 %v2698_v15  ;;  %2042 = vmatprep.subr.bf16.mxu0 %v2210_v12 }
 0x272   : > { %v1154_v19 = vadd.f32 %v1991_v52, %v1057_v13  ;;  %v1879_v21 = vadd.f32 %v1878_v18, %v1877_v10  ;;  %2067 = vmatprep.subr.bf16.mxu1 %v2702_v16  ;;  %2043 = vmatpush3.bf16.msra.mxu0 %v2210_v12  ;;  %v2211_v13 = vld [vmem:[#allocation7 + $0x8] sm:$0xff]   ;;  %v2212_v18 = vld [vmem:[#allocation7] sm:$0xff]  }
 0x273   : > { %v1880_v22 = vpop.f32.mrf.mxu0  ;;  %2044 = vmatprep.subr.bf16.mxu0 %v2211_v13 }
 0x274   : > { %v1196_v24 = vmax.f32 %v1154_v19, 0.0  ;;  %v1062_v25 = vadd.f32 %v1879_v21, %v2714_v20  ;;  %v1798_v21 = vld [vmem:[%s2820_s6] ss:$0 sm:$0xff] }
 0x275   : > { %v1881_v26 = vpop.f32.mrf.mxu0  ;;  %2075 = vmatpush3.bf16.msra.mxu1 %v2702_v16 }
 0x276   : > { %v1882_v27 = vadd.f32 %v1881_v26, %v1880_v22  ;;  %v1208_v28 = vpack.c.bf16 %v1196_v24, %v1195_v14  ;;  %2068 = vmatprep.subr.bf16.mxu1 %v2706_v17  ;;  %v1159_v15 = vadd.f32 %v1158_v11, %v1062_v25  ;;  %2045 = vmatpush3.bf16.msra.mxu0 %v2211_v13 }
 0x277   : > { %v1883_v29 = vpop.f32.mrf.mxu0  ;;  %2046 = vmatprep.subr.bf16.mxu0 %v2212_v18 }
 0x278   : > { %2021 = vmatmul.mubr.bf16.gmra.mxu1 %v1208_v28  ;;  %v1065_v31 = vadd.f32 %v1882_v27, %v2714_v20  ;;  %v1197_v37 = vmax.f32 %v1159_v15, 0.0 }
 0x279   : > { %v1884_v32 = vpop.f32.mrf.mxu0  ;;  %2076 = vmatpush3.bf16.msra.mxu1 %v2706_v17 }
 0x27a   : > { %v1885_v33 = vadd.f32 %v1884_v32, %v1883_v29  ;;  %v1162_v34 = vadd.f32 %v1161_v30, %v1065_v31  ;;  %2069 = vmatprep.subr.bf16.mxu1 %v2210_v12  ;;  %2047 = vmatpush3.bf16.msra.mxu0 %v2212_v18 }
 0x27b   : > { %v1886_v35 = vpop.f32.mrf.mxu0 }
 0x27c   : > { %v1070_v16 = vadd.f32 %v1885_v33, %v2714_v20  ;;  %v1198_v38 = vmax.f32 %v1162_v34, 0.0 }
 0x27d   : > { %v1887_v39 = vpop.f32.mrf.mxu0  ;;  %2077 = vmatpush3.bf16.msra.mxu1 %v2210_v12 }
 0x27e   : > { %v1209_v40 = vpack.c.bf16 %v1198_v38, %v1197_v37  ;;  %v1888_v41 = vadd.f32 %v1887_v39, %v1886_v35  ;;  %v1167_v44 = vadd.f32 %v1994_v3, %v1070_v16  ;;  %2070 = vmatprep.subr.bf16.mxu1 %v2211_v13 }
 0x27f   : > { %v1889_v42 = vpop.f32.mrf.mxu0 }
 0x280   : > { %v1073_v45 = vadd.f32 %v1888_v41, %v2714_v20  ;;  %2024 = vmatprep.mubr.bf16.mxu1 %v1209_v40  ;;  %v1199_v50 = vmax.f32 %v1167_v44, 0.0 }
 0x281   : > { %v1890_v46 = vpop.f32.mrf.mxu0  ;;  %2078 = vmatpush3.bf16.msra.mxu1 %v2211_v13 }
 0x282   : > { %v1170_v47 = vadd.f32 %v1995_v23, %v1073_v45  ;;  %v1891_v17 = vadd.f32 %v1890_v46, %v1889_v42  ;;  %2071 = vmatprep.subr.bf16.mxu1 %v2212_v18 }
 0x283   : > { %v1892_v48 = vpop.f32.mrf.mxu0 }
 0x284   : > { %v1200_v51 = vmax.f32 %v1170_v47, 0.0  ;;  %v1078_v52 = vadd.f32 %v1891_v17, %v2714_v20 }
 0x285   : > { %v1893_v53 = vpop.f32.mrf.mxu0  ;;  %2079 = vmatpush3.bf16.msra.mxu1 %v2212_v18 }
 0x286   : > { %v1894_v54 = vadd.f32 %v1893_v53, %v1892_v48  ;;  %v1210_v55 = vpack.c.bf16 %v1200_v51, %v1199_v50  ;;  %v1175_v58 = vadd.f32 %v1174_v43, %v1078_v52 }
 0x287   : > { %v1895_v56 = vpop.f32.mrf.mxu0 }
 0x288   : > { %2025 = vmatmul.mubr.bf16.gmra.mxu1 %v1210_v55  ;;  %v1081_v59 = vadd.f32 %v1894_v54, %v2714_v20  ;;  %v1201_v0 = vmax.f32 %v1175_v58, 0.0 }
 0x289   : > { %v1896_v60 = vpop.f32.mrf.mxu0 }
 0x28a   : > { %v1897_v61 = vadd.f32 %v1896_v60, %v1895_v56  ;;  %v1178_v62 = vadd.f32 %v1177_v57, %v1081_v59 }
 0x28b   : > { %v1898_v63 = vpop.f32.mrf.mxu0 }
 0x28c   : > { %v1086_v1 = vadd.f32 %v1897_v61, %v2714_v20  ;;  %v1202_v2 = vmax.f32 %v1178_v62, 0.0 }
 0x28d   : > { %v1899_v3 = vpop.f32.mrf.mxu0 }
 0x28e   : > { %v1211_v4 = vpack.c.bf16 %v1202_v2, %v1201_v0  ;;  %v1900_v5 = vadd.f32 %v1899_v3, %v1898_v63  ;;  %v1183_v6 = vadd.f32 %v1998_v36, %v1086_v1 }
 0x290   : > { %v1089_v7 = vadd.f32 %v1900_v5, %v2714_v20  ;;  %2028 = vmatprep.mubr.bf16.mxu1 %v1211_v4  ;;  %v1203_v9 = vmax.f32 %v1183_v6, 0.0 }
 0x292   : > { %v1186_v8 = vadd.f32 %v1999_v49, %v1089_v7 }
 0x294   : > { %v1204_v10 = vmax.f32 %v1186_v8, 0.0  ;;  %v1807_v8 = vld [vmem:[%s2822_s8] ss:$0 sm:$0xff] }
 0x296   : > { %v1212_v11 = vpack.c.bf16 %v1204_v10, %v1203_v9 }
 0x298   : > { %2029 = vmatmul.mubr.bf16.gmra.mxu1 %v1212_v11 }
 0x328   : > { %v2018_v20 = vpop.f32.mrf.mxu1 }
 0x329   : > { %v1327_v24 = vadd.f32 %v2018_v20, %v1798_v21 }
 0x32a   : > { %v1318_v19 = vpop.f32.mrf.mxu1 }
 0x32b   : > { %v1319_v23 = vadd.f32 %v1798_v21, %v1318_v19  ;;  %v1383_v30 = vmax.f32 %v1327_v24, 0.0 }
 0x32c   : > { %v2019_v22 = vpop.f32.mrf.mxu1 }
 0x32d   : > { %v1330_v14 = vadd.f32 %v2019_v22, %v1798_v21  ;;  %v1381_v28 = vmax.f32 %v1319_v23, 0.0 }
 0x32e   : > { %v1321_v25 = vpop.f32.mrf.mxu1 }
 0x32f   : > { %v1322_v26 = vadd.f32 %v1798_v21, %v1321_v25  ;;  %v1384_v27 = vmax.f32 %v1330_v14, 0.0 }
 0x331   : > { %v1382_v29 = vmax.f32 %v1322_v26, 0.0  ;;  %v1398_v31 = vpack.c.bf16 %v1384_v27, %v1383_v30 }
 0x333   : > { %v1397_v15 = vpack.c.bf16 %v1382_v29, %v1381_v28 }
 0x335   : > { %2048 = vmatprep.mubr.bf16.mxu0 %v1397_v15 }
 0x336   : > { %2049 = vmatmul.mubr.bf16.vlgmr.msra.gmra.mxu0 %v1398_v31 }
 0x338   : > { %v2022_v32 = vpop.f32.mrf.mxu1 }
 0x339   : > { %v1343_v37 = vadd.f32 %v2022_v32, %v1798_v21 }
 0x33a   : > { %v1334_v33 = vpop.f32.mrf.mxu1 }
 0x33b   : > { %v1335_v35 = vadd.f32 %v1798_v21, %v1334_v33  ;;  %v1387_v42 = vmax.f32 %v1343_v37, 0.0 }
 0x33c   : > { %v2023_v34 = vpop.f32.mrf.mxu1 }
 0x33d   : > { %v1346_v36 = vadd.f32 %v2023_v34, %v1798_v21  ;;  %v1385_v40 = vmax.f32 %v1335_v35, 0.0 }
 0x33e   : > { %v1337_v16 = vpop.f32.mrf.mxu1 }
 0x33f   : > { %v1338_v38 = vadd.f32 %v1798_v21, %v1337_v16  ;;  %v1388_v39 = vmax.f32 %v1346_v36, 0.0 }
 0x341   : > { %v1386_v41 = vmax.f32 %v1338_v38, 0.0  ;;  %v1400_v44 = vpack.c.bf16 %v1388_v39, %v1387_v42 }
 0x343   : > { %v1399_v43 = vpack.c.bf16 %v1386_v41, %v1385_v40 }
 0x345   : > { %2052 = vmatprep.mubr.bf16.mxu0 %v1399_v43 }
 0x346   : > { %2053 = vmatmul.mubr.bf16.gmra.mxu0 %v1400_v44 }
 0x348   : > { %v2026_v45 = vpop.f32.mrf.mxu1 }
 0x349   : > { %v1359_v49 = vadd.f32 %v2026_v45, %v1798_v21 }
 0x34a   : > { %v1350_v46 = vpop.f32.mrf.mxu1 }
 0x34b   : > { %v1351_v17 = vadd.f32 %v1798_v21, %v1350_v46  ;;  %v1391_v55 = vmax.f32 %v1359_v49, 0.0 }
 0x34c   : > { %v2027_v47 = vpop.f32.mrf.mxu1 }
 0x34d   : > { %v1362_v48 = vadd.f32 %v2027_v47, %v1798_v21  ;;  %v1389_v53 = vmax.f32 %v1351_v17, 0.0 }
 0x34e   : > { %v1353_v50 = vpop.f32.mrf.mxu1 }
 0x34f   : > { %v1354_v51 = vadd.f32 %v1798_v21, %v1353_v50  ;;  %v1392_v52 = vmax.f32 %v1362_v48, 0.0 }
 0x351   : > { %v1390_v54 = vmax.f32 %v1354_v51, 0.0  ;;  %v1402_v57 = vpack.c.bf16 %v1392_v52, %v1391_v55 }
 0x353   : > { %v1401_v56 = vpack.c.bf16 %v1390_v54, %v1389_v53 }
 0x355   : > { %2056 = vmatprep.mubr.bf16.mxu1 %v1401_v56 }
 0x356   : > { %2057 = vmatmul.mubr.bf16.vlgmr.msra.gmra.mxu1 %v1402_v57 }
 0x358   : > { %v2030_v58 = vpop.f32.mrf.mxu1 }
 0x359   : > { %v1375_v63 = vadd.f32 %v2030_v58, %v1798_v21 }
 0x35a   : > { %v1366_v59 = vpop.f32.mrf.mxu1 }
 0x35b   : > { %v1367_v61 = vadd.f32 %v1798_v21, %v1366_v59  ;;  %v1395_v5 = vmax.f32 %v1375_v63, 0.0 }
 0x35c   : > { %v2031_v60 = vpop.f32.mrf.mxu1 }
 0x35d   : > { %v1378_v62 = vadd.f32 %v2031_v60, %v1798_v21  ;;  %v1393_v3 = vmax.f32 %v1367_v61, 0.0 }
 0x35e   : > { %v1369_v0 = vpop.f32.mrf.mxu1 }
 0x35f   : > { %v1370_v1 = vadd.f32 %v1798_v21, %v1369_v0  ;;  %v1396_v2 = vmax.f32 %v1378_v62, 0.0 }
 0x361   : > { %v1394_v4 = vmax.f32 %v1370_v1, 0.0  ;;  %v1404_v7 = vpack.c.bf16 %v1396_v2, %v1395_v5 }
 0x363   : > { %v1403_v6 = vpack.c.bf16 %v1394_v4, %v1393_v3 }
 0x365   : > { %2060 = vmatprep.mubr.bf16.mxu1 %v1403_v6 }
 0x366   : > { %2061 = vmatmul.mubr.bf16.gmra.mxu1 %v1404_v7 }
 0x3f6   : > { %v2050_v9 = vpop.f32.mrf.mxu0 }
 0x3f7   : > { %v1519_v10 = vadd.f32 %v2050_v9, %v1807_v8 }
 0x3f8   : > { %v1510_v11 = vpop.f32.mrf.mxu0 }
 0x3f9   : > { %1575 = vst [vmem:[%s2509_s29 + $0x10] sm:$0xff] %v1519_v10  ;;  %v1511_v12 = vadd.f32 %v1807_v8, %v1510_v11 }
 0x3fa   : > { %v2051_v13 = vpop.f32.mrf.mxu0 }
 0x3fb   : > { %1573 = vst [vmem:[%s2509_s29] sm:$0xff] %v1511_v12  ;;  %v1522_v18 = vadd.f32 %v2051_v13, %v1807_v8 }
 0x3fc   : > { %v1513_v20 = vpop.f32.mrf.mxu0 }
 0x3fd   : > { %1576 = vst [vmem:[%s2509_s29 + $0x18] sm:$0xff] %v1522_v18  ;;  %v1514_v19 = vadd.f32 %v1807_v8, %v1513_v20 }
 0x3ff   : > { %1574 = vst [vmem:[%s2509_s29 + $0x8] sm:$0xff] %v1514_v19 }
 0x406   : > { %v2054_v21 = vpop.f32.mrf.mxu0 }
 0x407   : > { %v1535_v22 = vadd.f32 %v2054_v21, %v1807_v8 }
 0x408   : > { %v1526_v23 = vpop.f32.mrf.mxu0 }
 0x409   : > { %1579 = vst [vmem:[%s2509_s29 + $0x30] sm:$0xff] %v1535_v22  ;;  %v1527_v14 = vadd.f32 %v1807_v8, %v1526_v23 }
 0x40a   : > { %v2055_v24 = vpop.f32.mrf.mxu0 }
 0x40b   : > { %1577 = vst [vmem:[%s2509_s29 + $0x20] sm:$0xff] %v1527_v14  ;;  %v1538_v25 = vadd.f32 %v2055_v24, %v1807_v8 }
 0x40c   : > { %v1529_v26 = vpop.f32.mrf.mxu0 }
 0x40d   : > { %1580 = vst [vmem:[%s2509_s29 + $0x38] sm:$0xff] %v1538_v25  ;;  %v1530_v27 = vadd.f32 %v1807_v8, %v1529_v26 }
 0x40f   : > { %1578 = vst [vmem:[%s2509_s29 + $0x28] sm:$0xff] %v1530_v27 }
 0x416   : > { %v2058_v28 = vpop.f32.mrf.mxu1 }
 0x417   : > { %v1551_v29 = vadd.f32 %v2058_v28, %v1807_v8 }
 0x418   : > { %v1542_v30 = vpop.f32.mrf.mxu1 }
 0x419   : > { %1583 = vst [vmem:[%s2509_s29 + $0x50] sm:$0xff] %v1551_v29  ;;  %v1543_v15 = vadd.f32 %v1807_v8, %v1542_v30 }
 0x41a   : > { %v2059_v31 = vpop.f32.mrf.mxu1 }
 0x41b   : > { %1581 = vst [vmem:[%s2509_s29 + $0x40] sm:$0xff] %v1543_v15  ;;  %v1554_v32 = vadd.f32 %v2059_v31, %v1807_v8 }
 0x41c   : > { %v1545_v33 = vpop.f32.mrf.mxu1 }
 0x41d   : > { %1584 = vst [vmem:[%s2509_s29 + $0x58] sm:$0xff] %v1554_v32  ;;  %v1546_v34 = vadd.f32 %v1807_v8, %v1545_v33 }
 0x41f   : > { %1582 = vst [vmem:[%s2509_s29 + $0x48] sm:$0xff] %v1546_v34 }
 0x426   : > { %v2062_v35 = vpop.f32.mrf.mxu1 }
 0x427   : > { %v1567_v36 = vadd.f32 %v2062_v35, %v1807_v8 }
 0x428   : > { %v1558_v37 = vpop.f32.mrf.mxu1 }
 0x429   : > { %1587 = vst [vmem:[%s2509_s29 + $0x70] sm:$0xff] %v1567_v36  ;;  %v1559_v16 = vadd.f32 %v1807_v8, %v1558_v37 }
 0x42a   : > { %v2063_v38 = vpop.f32.mrf.mxu1 }
 0x42b   : > { %1585 = vst [vmem:[%s2509_s29 + $0x60] sm:$0xff] %v1559_v16  ;;  %v1570_v39 = vadd.f32 %v2063_v38, %v1807_v8 }
 0x42c   : > { %v1561_v40 = vpop.f32.mrf.mxu1 }
 0x42d   : > { %1588 = vst [vmem:[%s2509_s29 + $0x78] sm:$0xff] %v1570_v39  ;;  %v1562_v41 = vadd.f32 %v1807_v8, %v1561_v40 }
 0x42f   : > { %1586 = vst [vmem:[%s2509_s29 + $0x68] sm:$0xff] %v1562_v41 }
 0x430   : > { %2264 = shalt.err (!%p2261_p13)
}
 0x431   : > { %s2265_s29 = scalar_lea.hbm %s2766_s20, 2048  ;;  %s2269_s23 = scalar_lea.hbm %s2862_s28, 4096 }
 0x432   : > { %p2266_p0 = scmp.ne.s32.totalorder %s2766_s20, %s2265_s29  ;;  %p2270_p3 = scmp.lt.s32.totalorder %s2766_s20, %s2862_s28 }
 0x433   : > { %p2271_p4 = scmp.lt.s32.totalorder %s2269_s23, %s2265_s29 }
 0x434   : > { %p2267_p1 = pnand %p2266_p0, %p2456_p10 }
 0x435   : > { %p2272_p5 = por %p2271_p4, %p2270_p3 }
 0x436   : > { %p2268_p2 = pneg %p2267_p1 }
 0x438   : > { %p2273_p6 = pnand %p2272_p5, %p2268_p2 }
 0x43a   : > { %2276 = shalt.err (!%p2273_p6)
}
 0x43b   : > { %s2363_s2 = smov 128   ;;  %s2364_s11 = smov 8  }
 0x43c   : > { %2086 = dma.vmem_to_hbm [thread:$0]  (%p2456_p10), %s2768_s7, 2048, %s2766_s20, %s2774_s17, %s2363_s2, %s2363_s2, %s2364_s11  }
 0x43d PF: > { %s2864_s13 = sld [smem:[#allocation19_spill]] }
 0x43e   : > { %s2865_s26 = sld [smem:[#allocation17_spill]] }
 0x43f   : > { %s2866_s25 = sld [smem:[#allocation23_spill]] }
 0x443   : > { %p2099_p7 = scmp.ge.s32.totalorder %s2864_s13, 2 }
 0x444   : > { %s1618_s22 = sand.u32 1, %s2865_s26  }
 0x445   : > { %p2867_p8 = scmp.ne.s32.totalorder %s2866_s25, 0  ;;  %s1619_s30 = scalar_lea.sflag [#allocation9], %s1618_s22 }
 0x447   : > { %p2093_p9 = pnand %p2099_p7, %p2867_p8 }
 0x449   : > { %p2094_p12 = pneg %p2093_p9 }
 0x44b   : > { %2320 = dma.done.wait (%p2094_p12), %s1619_s30, 2048  }
 0x44c   : > { %2322 = vsyncadd (%p2094_p12), %s1619_s30, 4294965248  ;;  %s2868_s16 = sld [smem:[#allocation20_spill]]  ;;  %s2871_s14 = smov %s2329_s15 }
 0x44d   : > { %s2869_s12 = sld [smem:[#allocation18_spill]] }
 0x44e   : > { %s2870_s0 = sld [smem:[#allocation21_spill]] }
 0x452   : > { %p26_p11 = scmp.ge.s32.totalorder %s2868_s16, 4  }
 0x453   : > { %s2872_s15 = smov %s2869_s12 }
 0x454   :  { %28 = sbr.rel (!%p26_p11) target bundleno = 20 (0x14), region = 266 }
 0x459   :  { %1624 = vsyncpa [#allocation8], 1 }
 0x45a   :  { %1626 = vsyncpa [#allocation8 + $0x1], 1 }
 0x45b   :  { %1627 = vsyncpa [#allocation9], 1 }
 0x45c   :  { %1629 = vsyncpa [#allocation9 + $0x1], 1 }
 0x45d   :  { %1630 = vsyncmov [#allocation3] }
 0x460   :  { %s1631_s27 = vpop.sfrf %1630 }
 0x461   :  { %p1821_p10 = scmp.ne.s32.totalorder %s1631_s27, 0 }
 0x463   :  { %1635 = shalt.err (%p1821_p10)  }
 0x464   :  { %1637 = vsyncmov [#allocation3 + $0x1] }
 0x467   :  { %s1638_s7 = vpop.sfrf %1637 }
 0x468   :  { %p1822_p13 = scmp.ne.s32.totalorder %s1638_s7, 0 }
 0x46a   :  { %1642 = shalt.err (%p1822_p13)  }

</bundles_post_ra>
